<compile_context>
chip_gen: v7x
topology: tpu7x:2x2x1
jax: 0.10.0
libtpu: 0.0.40
codegen_flags: <defaults>
</compile_context>

<pallas_src>
import jax
import jax.numpy as jnp
from jax.experimental import pallas as pl
from jax.experimental.pallas import tpu as pltpu


def _cbam_kernel(x_ref, w1t_ref, w2t_ref, ws_ref, o_ref):
    # x_ref block: (Bt, C, L); w1t: (C, H); w2t: (H, C); ws (SMEM): (2, 7)
    Bt, C, L = x_ref.shape
    x = x_ref[...]                                  # native dtype (f32 or bf16)
    xf = x.astype(jnp.float32)

    # ---------------- Channel attention ----------------
    # AdaptiveAvgPool1d(1) / AdaptiveMaxPool1d(1) over L, f32 accumulation.
    avg = jnp.mean(xf, axis=2)                      # (Bt, C)
    mx = jnp.max(xf, axis=2)                        # (Bt, C)
    # Fuse the two MLP passes: rows [0, Bt) = avg stats, rows [Bt, 2Bt) = max.
    p = jnp.concatenate([avg, mx], axis=0)          # (2*Bt, C)

    md = w1t_ref.dtype                              # matmul dtype (bf16 default)
    # Conv1d(C->H,1) -> ReLU -> Conv1d(H->C,1), bias-free, one matmul chain.
    h = jnp.maximum(
        jnp.dot(p.astype(md), w1t_ref[...], preferred_element_type=jnp.float32),
        0.0)                                        # (2*Bt, H) f32
    o = jnp.dot(h.astype(md), w2t_ref[...],
                preferred_element_type=jnp.float32) # (2*Bt, C) f32

    channel_w = jax.nn.sigmoid(o[:Bt] + o[Bt:])     # (Bt, C) f32
    # Big slab multiply in x's dtype (bf16 on v6e/v7x halves VPU work + temps).
    x1 = x * channel_w.astype(x.dtype)[:, :, None]  # (Bt, C, L)

    # ---------------- Spatial attention -----------------
    x1f = x1.astype(jnp.float32)
    s_avg = jnp.mean(x1f, axis=1)                   # (Bt, L) mean over channels
    s_max = jnp.max(x1f, axis=1)                    # (Bt, L) max over channels
    # Stack into sublanes so each conv tap needs only ONE pltpu.roll.
    s = jnp.concatenate([s_avg, s_max], axis=0)     # (2*Bt, L)

    lane = jax.lax.broadcasted_iota(jnp.int32, (1, L), 1)

    # Conv1d(2 -> 1, kernel_size=7, padding=3, bias=False); chan 0 = avg, 1 = max.
    acc_a = jnp.zeros((Bt, L), jnp.float32)
    acc_m = jnp.zeros((Bt, L), jnp.float32)
    for k in range(7):
        d = k - 3
        # shifted[i] = s[i + d], with circular roll + edge mask == zero padding.
        shifted = s if d == 0 else pltpu.roll(s, shift=(-d) % L, axis=1)
        if d < 0:    # wrapped lanes on the left edge correspond to zero padding
            shifted = jnp.where(lane >= -d, shifted, 0.0)
        elif d > 0:  # wrapped lanes on the right edge
            shifted = jnp.where(lane < L - d, shifted, 0.0)
        # Scalar taps straight from SMEM (no per-row select / lane-broadcast).
        acc_a = acc_a + shifted[:Bt] * ws_ref[0, k]
        acc_m = acc_m + shifted[Bt:] * ws_ref[1, k]

    spatial_w = jax.nn.sigmoid(acc_a + acc_m)       # (Bt, L) f32
    o_ref[...] = (x1 * spatial_w.astype(x.dtype)[:, None, :]).astype(o_ref.dtype)


def _pick_block_b(B, bytes_per_batch, *, target_bytes=1 << 20, max_bytes=2 << 20):
    """Pick a batch tile: divisor of B, x-tile <= ~2 MiB, near ~1 MiB.

    Preference order: sublane-aligned (multiple of 8, or the whole batch),
    even (or 1) grid length for v7x megacore balance, then tile size closest
    to the ~1 MiB target.
    """
    cap = max(1, min(B, max_bytes // max(1, bytes_per_batch)))
    divisors = [d for d in range(1, B + 1) if B % d == 0 and d <= cap]

    def score(d):
        steps = B // d
        return (
            d % 8 == 0 or d == B,              # aligned avg/max stacking & splits
            steps == 1 or steps % 2 == 0,      # even grid -> balanced v7x cores
            -abs(d * bytes_per_batch - target_bytes),
        )

    return max(divisors, key=score)


def cbam_pallas(x, w_fc1, w_fc2, w_spatial, *, block_b=None,
                mlp_dtype=jnp.bfloat16, vmem_limit_bytes=32 * 1024 * 1024):
    """x: (B, C, L); w_fc1: (H, C); w_fc2: (C, H); w_spatial: (2, 7).

    Feed x as bf16 for halved HBM traffic (output keeps x's dtype); the kernel
    accumulates all pooled stats in f32 either way.
    """
    B, C, L = x.shape
    H = w_fc1.shape[0]
    assert w_fc1.shape == (H, C) and w_fc2.shape == (C, H) and w_spatial.shape == (2, 7)
    # Performance note: C % 8 == 0 and L % 128 == 0 keep vregs fully occupied.

    elsize = x.dtype.itemsize
    if block_b is None:
        block_b = _pick_block_b(B, C * L * elsize)
    if B % block_b != 0:
        raise ValueError(f"block_b={block_b} must divide B={B}")
    grid = (B // block_b,)

    # Pre-transpose / pre-cast once in plain JAX so the in-kernel chain is
    # (2Bt,C)@(C,H)@(H,C) in mlp_dtype straight off VMEM.
    w1t = jnp.transpose(w_fc1).astype(mlp_dtype)   # (C, H)
    w2t = jnp.transpose(w_fc2).astype(mlp_dtype)   # (H, C)
    ws = w_spatial.astype(jnp.float32)             # (2, 7) conv taps -> SMEM

    cost = pl.CostEstimate(
        flops=int(6 * B * C * L + 28 * B * L + 8 * B * C * H),
        transcendentals=int(B * (C + L)),
        bytes_accessed=int(2 * B * C * L * elsize
                           + (w1t.size + w2t.size) * w1t.dtype.itemsize
                           + ws.size * 4),
    )

    return pl.pallas_call(
        _cbam_kernel,
        out_shape=jax.ShapeDtypeStruct((B, C, L), x.dtype),
        grid=grid,
        in_specs=[
            pl.BlockSpec((block_b, C, L), lambda b: (b, 0, 0)),
            pl.BlockSpec((C, H), lambda b: (0, 0)),
            pl.BlockSpec((H, C), lambda b: (0, 0)),
            # 14 conv taps, read as scalars inside the tap loop.
            pl.BlockSpec(memory_space=pltpu.MemorySpace.SMEM),
        ],
        out_specs=pl.BlockSpec((block_b, C, L), lambda b: (b, 0, 0)),
        compiler_params=pltpu.CompilerParams(
            dimension_semantics=("parallel",),
            vmem_limit_bytes=vmem_limit_bytes),
        cost_estimate=cost,
    )(x, w1t, w2t, ws)


def cbam_reference(x, w_fc1, w_fc2, w_spatial):
    """Pure-JAX reference mirroring the PyTorch forward."""
    B, C, L = x.shape
    avg = jnp.mean(x, axis=-1)                            # (B, C)
    mx = jnp.max(x, axis=-1)                              # (B, C)

    def fc(v):
        h = jnp.maximum(jnp.einsum("hc,bc->bh", w_fc1, v), 0.0)
        return jnp.einsum("ch,bh->bc", w_fc2, h)

    cw = jax.nn.sigmoid(fc(avg) + fc(mx))[:, :, None]     # (B, C, 1)
    x1 = x * cw

    s_avg = jnp.mean(x1, axis=1)                          # (B, L)
    s_max = jnp.max(x1, axis=1)                           # (B, L)
    y = jnp.stack([s_avg, s_max], axis=1)                 # (B, 2, L)
    yp = jnp.pad(y, ((0, 0), (0, 0), (3, 3)))
    out = jnp.zeros((B, L), x.dtype)
    for k in range(7):
        out = out + w_spatial[0, k] * yp[:, 0, k:k + L] \
                  + w_spatial[1, k] * yp[:, 1, k:k + L]
    sw = jax.nn.sigmoid(out)[:, None, :]                  # (B, 1, L)
    return x1 * sw


if __name__ == "__main__":
    B, C, L = 8, 32, 128
    ratio = 16
    H = C // ratio  # = 2

    key = jax.random.PRNGKey(0)
    kx, k1, k2, k3 = jax.random.split(key, 4)
    x = jax.random.normal(kx, (B, C, L), dtype=jnp.float32)
    # Deterministic synthetic weights (shapes from the module __init__):
    #   fc[0]: Conv1d(C, C//ratio, 1, bias=False)   -> (H, C)
    #   fc[2]: Conv1d(C//ratio, C, 1, bias=False)   -> (C, H)
    #   SpatialAttention.conv1: Conv1d(2, 1, 7)     -> (2, 7) taps (out-channel squeezed)
    w_fc1 = 0.3 * jax.random.normal(k1, (H, C), dtype=jnp.float32)
    w_fc2 = 0.3 * jax.random.normal(k2, (C, H), dtype=jnp.float32)
    w_spatial = 0.3 * jax.random.normal(k3, (2, 7), dtype=jnp.float32)

    ref = cbam_reference(x, w_fc1, w_fc2, w_spatial)

    # 1) Tight structural check: all-f32 path must match the JAX reference.
    out_f32 = jax.block_until_ready(
        cbam_pallas(x, w_fc1, w_fc2, w_spatial, mlp_dtype=jnp.float32))
    if not jnp.allclose(out_f32, ref, rtol=1e-4, atol=1e-5):
        raise AssertionError("f32 Pallas CBAM output does not match JAX reference")

    # 2) Default fast path: bf16 MXU matmuls for the tiny channel MLP.
    out_fast = jax.block_until_ready(cbam_pallas(x, w_fc1, w_fc2, w_spatial))
    if not jnp.allclose(out_fast, ref, rtol=5e-2, atol=5e-2):
        raise AssertionError("bf16-MLP Pallas CBAM deviates too much from reference")

    # 3) bf16 HBM I/O path (kernel is memory-bound; halves in+out bytes).
    x_bf16 = x.astype(jnp.bfloat16)
    ref_q = cbam_reference(x_bf16.astype(jnp.float32), w_fc1, w_fc2, w_spatial)
    out_bf16 = jax.block_until_ready(cbam_pallas(x_bf16, w_fc1, w_fc2, w_spatial))
    if not jnp.allclose(out_bf16.astype(jnp.float32), ref_q, rtol=5e-2, atol=5e-2):
        raise AssertionError("bf16-I/O Pallas CBAM deviates too much from reference")

    print("KERNEL_OK")
</pallas_src>

<mosaic_0001>
module attributes {stable_mosaic.version = 11 : i64} {
  func.func @_cbam_kernel(%arg0: i32, %arg1: memref<8x32x128xf32, #tpu.memory_space<vmem>>, %arg2: memref<32x2xf32, #tpu.memory_space<vmem>>, %arg3: memref<2x32xf32, #tpu.memory_space<vmem>>, %arg4: memref<2x7xf32, #tpu.memory_space<smem>>, %arg5: memref<8x32x128xf32, #tpu.memory_space<vmem>>) attributes {dimension_semantics = [#tpu.dimension_semantics<parallel>], iteration_bounds = array<i64: 1>, scalar_prefetch = 0 : i64, scratch_operands = 0 : i64, tpu.core_type = #tpu.core_type<tc>, window_params = [{transform_indices = @transform_0, window_bounds = array<i64: 8, 32, 128>}, {pipeline_mode = #tpu.pipeline_mode<synchronous>, transform_indices = @transform_1, window_bounds = array<i64: 32, 2>}, {pipeline_mode = #tpu.pipeline_mode<synchronous>, transform_indices = @transform_2, window_bounds = array<i64: 2, 32>}, {transform_indices = @transform_3, window_bounds = array<i64: 2, 7>}, {transform_indices = @transform_4, window_bounds = array<i64: 8, 32, 128>}]} {
    %c0 = arith.constant 0 : index
    %c0_0 = arith.constant 0 : index
    %c0_1 = arith.constant 0 : index
    %0 = vector.load %arg1[%c0, %c0_0, %c0_1] : memref<8x32x128xf32, #tpu.memory_space<vmem>>, vector<8x32x128xf32>
    %cst = arith.constant dense<0.000000e+00> : vector<8x32xf32>
    %1 = vector.multi_reduction <add>, %0, %cst [2] : vector<8x32x128xf32> to vector<8x32xf32>
    %cst_2 = arith.constant 1.280000e+02 : f32
    %2 = vector.broadcast %cst_2 : f32 to vector<8x32xf32>
    %3 = arith.divf %1, %2 : vector<8x32xf32>
    %cst_3 = arith.constant dense<0xFF800000> : vector<8x32xf32>
    %4 = vector.multi_reduction <maximumf>, %0, %cst_3 [2] : vector<8x32x128xf32> to vector<8x32xf32>
    %5 = tpu.concatenate %3, %4 in 0 : vector<8x32xf32>, vector<8x32xf32> -> vector<16x32xf32>
    %c0_4 = arith.constant 0 : index
    %c0_5 = arith.constant 0 : index
    %6 = vector.load %arg2[%c0_4, %c0_5] : memref<32x2xf32, #tpu.memory_space<vmem>>, vector<32x2xf32>
    %cst_6 = arith.constant dense<0.000000e+00> : vector<16x2xf32>
    %7 = tpu.matmul %5, %6, %cst_6 {dimension_numbers = #tpu.dot_dimension_numbers<[1], [0], [0], [1], [0, 0, 1, 1], [], []>} : vector<16x32xf32>, vector<32x2xf32>, vector<16x2xf32> -> vector<16x2xf32>
    %cst_7 = arith.constant 0.000000e+00 : f32
    %8 = vector.broadcast %cst_7 : f32 to vector<16x2xf32>
    %9 = arith.maximumf %7, %8 : vector<16x2xf32>
    %c0_8 = arith.constant 0 : index
    %c0_9 = arith.constant 0 : index
    %10 = vector.load %arg3[%c0_8, %c0_9] : memref<2x32xf32, #tpu.memory_space<vmem>>, vector<2x32xf32>
    %cst_10 = arith.constant dense<0.000000e+00> : vector<16x32xf32>
    %11 = tpu.matmul %9, %10, %cst_10 {dimension_numbers = #tpu.dot_dimension_numbers<[1], [0], [0], [1], [0, 0, 1, 1], [], []>} : vector<16x2xf32>, vector<2x32xf32>, vector<16x32xf32> -> vector<16x32xf32>
    %12 = vector.extract_strided_slice %11 {offsets = [0, 0], sizes = [8, 32], strides = [1, 1]} : vector<16x32xf32> to vector<8x32xf32>
    %13 = vector.extract_strided_slice %11 {offsets = [8, 0], sizes = [8, 32], strides = [1, 1]} : vector<16x32xf32> to vector<8x32xf32>
    %14 = arith.addf %12, %13 : vector<8x32xf32>
    %15 = arith.negf %14 : vector<8x32xf32>
    %16 = math.exp %15 : vector<8x32xf32>
    %cst_11 = arith.constant 1.000000e+00 : f32
    %17 = vector.broadcast %cst_11 : f32 to vector<8x32xf32>
    %18 = arith.addf %17, %16 : vector<8x32xf32>
    %19 = arith.divf %17, %18 : vector<8x32xf32>
    %20 = vector.shape_cast %19 : vector<8x32xf32> to vector<8x32x1xf32>
    %21 = vector.broadcast %20 : vector<8x32x1xf32> to vector<8x32x128xf32>
    %22 = arith.mulf %0, %21 : vector<8x32x128xf32>
    %cst_12 = arith.constant dense<0.000000e+00> : vector<8x128xf32>
    %23 = vector.multi_reduction <add>, %22, %cst_12 [1] : vector<8x32x128xf32> to vector<8x128xf32>
    %cst_13 = arith.constant 3.200000e+01 : f32
    %24 = vector.broadcast %cst_13 : f32 to vector<8x128xf32>
    %25 = arith.divf %23, %24 : vector<8x128xf32>
    %cst_14 = arith.constant dense<0xFF800000> : vector<8x128xf32>
    %26 = vector.multi_reduction <maximumf>, %22, %cst_14 [1] : vector<8x32x128xf32> to vector<8x128xf32>
    %27 = tpu.concatenate %25, %26 in 0 : vector<8x128xf32>, vector<8x128xf32> -> vector<16x128xf32>
    %28 = tpu.iota {dimensions = array<i32: 1>} : vector<1x128xi32>
    %cst_15 = arith.constant 0.000000e+00 : f32
    %29 = vector.broadcast %cst_15 : f32 to vector<8x128xf32>
    %cst_16 = arith.constant 0.000000e+00 : f32
    %30 = vector.broadcast %cst_16 : f32 to vector<8x128xf32>
    %c3_i32 = arith.constant 3 : i32
    %31 = tpu.dynamic_rotate %27 by %c3_i32 dim 1 : vector<16x128xf32>, i32 -> vector<16x128xf32>
    %c3_i32_17 = arith.constant 3 : i32
    %32 = vector.broadcast %c3_i32_17 : i32 to vector<1x128xi32>
    %33 = arith.cmpi sge, %28, %32 : vector<1x128xi32>
    %cst_18 = arith.constant 0.000000e+00 : f32
    %34 = vector.shape_cast %33 : vector<1x128xi1> to vector<1x128xi1>
    %35 = vector.broadcast %34 : vector<1x128xi1> to vector<16x128xi1>
    %36 = vector.broadcast %cst_18 : f32 to vector<16x128xf32>
    %37 = arith.select %35, %31, %36 : vector<16x128xi1>, vector<16x128xf32>
    %38 = vector.extract_strided_slice %37 {offsets = [0, 0], sizes = [8, 128], strides = [1, 1]} : vector<16x128xf32> to vector<8x128xf32>
    %c0_19 = arith.constant 0 : index
    %c0_20 = arith.constant 0 : index
    %39 = memref.load %arg4[%c0_19, %c0_20] : memref<2x7xf32, #tpu.memory_space<smem>>
    %40 = vector.broadcast %39 : f32 to vector<8x128xf32>
    %41 = arith.mulf %38, %40 : vector<8x128xf32>
    %42 = arith.addf %29, %41 : vector<8x128xf32>
    %43 = vector.extract_strided_slice %37 {offsets = [8, 0], sizes = [8, 128], strides = [1, 1]} : vector<16x128xf32> to vector<8x128xf32>
    %c1 = arith.constant 1 : index
    %c0_21 = arith.constant 0 : index
    %44 = memref.load %arg4[%c1, %c0_21] : memref<2x7xf32, #tpu.memory_space<smem>>
    %45 = vector.broadcast %44 : f32 to vector<8x128xf32>
    %46 = arith.mulf %43, %45 : vector<8x128xf32>
    %47 = arith.addf %30, %46 : vector<8x128xf32>
    %c2_i32 = arith.constant 2 : i32
    %48 = tpu.dynamic_rotate %27 by %c2_i32 dim 1 : vector<16x128xf32>, i32 -> vector<16x128xf32>
    %c2_i32_22 = arith.constant 2 : i32
    %49 = vector.broadcast %c2_i32_22 : i32 to vector<1x128xi32>
    %50 = arith.cmpi sge, %28, %49 : vector<1x128xi32>
    %cst_23 = arith.constant 0.000000e+00 : f32
    %51 = vector.shape_cast %50 : vector<1x128xi1> to vector<1x128xi1>
    %52 = vector.broadcast %51 : vector<1x128xi1> to vector<16x128xi1>
    %53 = vector.broadcast %cst_23 : f32 to vector<16x128xf32>
    %54 = arith.select %52, %48, %53 : vector<16x128xi1>, vector<16x128xf32>
    %55 = vector.extract_strided_slice %54 {offsets = [0, 0], sizes = [8, 128], strides = [1, 1]} : vector<16x128xf32> to vector<8x128xf32>
    %c0_24 = arith.constant 0 : index
    %c1_25 = arith.constant 1 : index
    %56 = memref.load %arg4[%c0_24, %c1_25] : memref<2x7xf32, #tpu.memory_space<smem>>
    %57 = vector.broadcast %56 : f32 to vector<8x128xf32>
    %58 = arith.mulf %55, %57 : vector<8x128xf32>
    %59 = arith.addf %42, %58 : vector<8x128xf32>
    %60 = vector.extract_strided_slice %54 {offsets = [8, 0], sizes = [8, 128], strides = [1, 1]} : vector<16x128xf32> to vector<8x128xf32>
    %c1_26 = arith.constant 1 : index
    %c1_27 = arith.constant 1 : index
    %61 = memref.load %arg4[%c1_26, %c1_27] : memref<2x7xf32, #tpu.memory_space<smem>>
    %62 = vector.broadcast %61 : f32 to vector<8x128xf32>
    %63 = arith.mulf %60, %62 : vector<8x128xf32>
    %64 = arith.addf %47, %63 : vector<8x128xf32>
    %c1_i32 = arith.constant 1 : i32
    %65 = tpu.dynamic_rotate %27 by %c1_i32 dim 1 : vector<16x128xf32>, i32 -> vector<16x128xf32>
    %c1_i32_28 = arith.constant 1 : i32
    %66 = vector.broadcast %c1_i32_28 : i32 to vector<1x128xi32>
    %67 = arith.cmpi sge, %28, %66 : vector<1x128xi32>
    %cst_29 = arith.constant 0.000000e+00 : f32
    %68 = vector.shape_cast %67 : vector<1x128xi1> to vector<1x128xi1>
    %69 = vector.broadcast %68 : vector<1x128xi1> to vector<16x128xi1>
    %70 = vector.broadcast %cst_29 : f32 to vector<16x128xf32>
    %71 = arith.select %69, %65, %70 : vector<16x128xi1>, vector<16x128xf32>
    %72 = vector.extract_strided_slice %71 {offsets = [0, 0], sizes = [8, 128], strides = [1, 1]} : vector<16x128xf32> to vector<8x128xf32>
    %c0_30 = arith.constant 0 : index
    %c2 = arith.constant 2 : index
    %73 = memref.load %arg4[%c0_30, %c2] : memref<2x7xf32, #tpu.memory_space<smem>>
    %74 = vector.broadcast %73 : f32 to vector<8x128xf32>
    %75 = arith.mulf %72, %74 : vector<8x128xf32>
    %76 = arith.addf %59, %75 : vector<8x128xf32>
    %77 = vector.extract_strided_slice %71 {offsets = [8, 0], sizes = [8, 128], strides = [1, 1]} : vector<16x128xf32> to vector<8x128xf32>
    %c1_31 = arith.constant 1 : index
    %c2_32 = arith.constant 2 : index
    %78 = memref.load %arg4[%c1_31, %c2_32] : memref<2x7xf32, #tpu.memory_space<smem>>
    %79 = vector.broadcast %78 : f32 to vector<8x128xf32>
    %80 = arith.mulf %77, %79 : vector<8x128xf32>
    %81 = arith.addf %64, %80 : vector<8x128xf32>
    %82 = vector.extract_strided_slice %27 {offsets = [0, 0], sizes = [8, 128], strides = [1, 1]} : vector<16x128xf32> to vector<8x128xf32>
    %c0_33 = arith.constant 0 : index
    %c3 = arith.constant 3 : index
    %83 = memref.load %arg4[%c0_33, %c3] : memref<2x7xf32, #tpu.memory_space<smem>>
    %84 = vector.broadcast %83 : f32 to vector<8x128xf32>
    %85 = arith.mulf %82, %84 : vector<8x128xf32>
    %86 = arith.addf %76, %85 : vector<8x128xf32>
    %87 = vector.extract_strided_slice %27 {offsets = [8, 0], sizes = [8, 128], strides = [1, 1]} : vector<16x128xf32> to vector<8x128xf32>
    %c1_34 = arith.constant 1 : index
    %c3_35 = arith.constant 3 : index
    %88 = memref.load %arg4[%c1_34, %c3_35] : memref<2x7xf32, #tpu.memory_space<smem>>
    %89 = vector.broadcast %88 : f32 to vector<8x128xf32>
    %90 = arith.mulf %87, %89 : vector<8x128xf32>
    %91 = arith.addf %81, %90 : vector<8x128xf32>
    %c127_i32 = arith.constant 127 : i32
    %92 = tpu.dynamic_rotate %27 by %c127_i32 dim 1 : vector<16x128xf32>, i32 -> vector<16x128xf32>
    %c127_i32_36 = arith.constant 127 : i32
    %93 = vector.broadcast %c127_i32_36 : i32 to vector<1x128xi32>
    %94 = arith.cmpi slt, %28, %93 : vector<1x128xi32>
    %cst_37 = arith.constant 0.000000e+00 : f32
    %95 = vector.shape_cast %94 : vector<1x128xi1> to vector<1x128xi1>
    %96 = vector.broadcast %95 : vector<1x128xi1> to vector<16x128xi1>
    %97 = vector.broadcast %cst_37 : f32 to vector<16x128xf32>
    %98 = arith.select %96, %92, %97 : vector<16x128xi1>, vector<16x128xf32>
    %99 = vector.extract_strided_slice %98 {offsets = [0, 0], sizes = [8, 128], strides = [1, 1]} : vector<16x128xf32> to vector<8x128xf32>
    %c0_38 = arith.constant 0 : index
    %c4 = arith.constant 4 : index
    %100 = memref.load %arg4[%c0_38, %c4] : memref<2x7xf32, #tpu.memory_space<smem>>
    %101 = vector.broadcast %100 : f32 to vector<8x128xf32>
    %102 = arith.mulf %99, %101 : vector<8x128xf32>
    %103 = arith.addf %86, %102 : vector<8x128xf32>
    %104 = vector.extract_strided_slice %98 {offsets = [8, 0], sizes = [8, 128], strides = [1, 1]} : vector<16x128xf32> to vector<8x128xf32>
    %c1_39 = arith.constant 1 : index
    %c4_40 = arith.constant 4 : index
    %105 = memref.load %arg4[%c1_39, %c4_40] : memref<2x7xf32, #tpu.memory_space<smem>>
    %106 = vector.broadcast %105 : f32 to vector<8x128xf32>
    %107 = arith.mulf %104, %106 : vector<8x128xf32>
    %108 = arith.addf %91, %107 : vector<8x128xf32>
    %c126_i32 = arith.constant 126 : i32
    %109 = tpu.dynamic_rotate %27 by %c126_i32 dim 1 : vector<16x128xf32>, i32 -> vector<16x128xf32>
    %c126_i32_41 = arith.constant 126 : i32
    %110 = vector.broadcast %c126_i32_41 : i32 to vector<1x128xi32>
    %111 = arith.cmpi slt, %28, %110 : vector<1x128xi32>
    %cst_42 = arith.constant 0.000000e+00 : f32
    %112 = vector.shape_cast %111 : vector<1x128xi1> to vector<1x128xi1>
    %113 = vector.broadcast %112 : vector<1x128xi1> to vector<16x128xi1>
    %114 = vector.broadcast %cst_42 : f32 to vector<16x128xf32>
    %115 = arith.select %113, %109, %114 : vector<16x128xi1>, vector<16x128xf32>
    %116 = vector.extract_strided_slice %115 {offsets = [0, 0], sizes = [8, 128], strides = [1, 1]} : vector<16x128xf32> to vector<8x128xf32>
    %c0_43 = arith.constant 0 : index
    %c5 = arith.constant 5 : index
    %117 = memref.load %arg4[%c0_43, %c5] : memref<2x7xf32, #tpu.memory_space<smem>>
    %118 = vector.broadcast %117 : f32 to vector<8x128xf32>
    %119 = arith.mulf %116, %118 : vector<8x128xf32>
    %120 = arith.addf %103, %119 : vector<8x128xf32>
    %121 = vector.extract_strided_slice %115 {offsets = [8, 0], sizes = [8, 128], strides = [1, 1]} : vector<16x128xf32> to vector<8x128xf32>
    %c1_44 = arith.constant 1 : index
    %c5_45 = arith.constant 5 : index
    %122 = memref.load %arg4[%c1_44, %c5_45] : memref<2x7xf32, #tpu.memory_space<smem>>
    %123 = vector.broadcast %122 : f32 to vector<8x128xf32>
    %124 = arith.mulf %121, %123 : vector<8x128xf32>
    %125 = arith.addf %108, %124 : vector<8x128xf32>
    %c125_i32 = arith.constant 125 : i32
    %126 = tpu.dynamic_rotate %27 by %c125_i32 dim 1 : vector<16x128xf32>, i32 -> vector<16x128xf32>
    %c125_i32_46 = arith.constant 125 : i32
    %127 = vector.broadcast %c125_i32_46 : i32 to vector<1x128xi32>
    %128 = arith.cmpi slt, %28, %127 : vector<1x128xi32>
    %cst_47 = arith.constant 0.000000e+00 : f32
    %129 = vector.shape_cast %128 : vector<1x128xi1> to vector<1x128xi1>
    %130 = vector.broadcast %129 : vector<1x128xi1> to vector<16x128xi1>
    %131 = vector.broadcast %cst_47 : f32 to vector<16x128xf32>
    %132 = arith.select %130, %126, %131 : vector<16x128xi1>, vector<16x128xf32>
    %133 = vector.extract_strided_slice %132 {offsets = [0, 0], sizes = [8, 128], strides = [1, 1]} : vector<16x128xf32> to vector<8x128xf32>
    %c0_48 = arith.constant 0 : index
    %c6 = arith.constant 6 : index
    %134 = memref.load %arg4[%c0_48, %c6] : memref<2x7xf32, #tpu.memory_space<smem>>
    %135 = vector.broadcast %134 : f32 to vector<8x128xf32>
    %136 = arith.mulf %133, %135 : vector<8x128xf32>
    %137 = arith.addf %120, %136 : vector<8x128xf32>
    %138 = vector.extract_strided_slice %132 {offsets = [8, 0], sizes = [8, 128], strides = [1, 1]} : vector<16x128xf32> to vector<8x128xf32>
    %c1_49 = arith.constant 1 : index
    %c6_50 = arith.constant 6 : index
    %139 = memref.load %arg4[%c1_49, %c6_50] : memref<2x7xf32, #tpu.memory_space<smem>>
    %140 = vector.broadcast %139 : f32 to vector<8x128xf32>
    %141 = arith.mulf %138, %140 : vector<8x128xf32>
    %142 = arith.addf %125, %141 : vector<8x128xf32>
    %143 = arith.addf %137, %142 : vector<8x128xf32>
    %144 = arith.negf %143 : vector<8x128xf32>
    %145 = math.exp %144 : vector<8x128xf32>
    %cst_51 = arith.constant 1.000000e+00 : f32
    %146 = vector.broadcast %cst_51 : f32 to vector<8x128xf32>
    %147 = arith.addf %146, %145 : vector<8x128xf32>
    %148 = arith.divf %146, %147 : vector<8x128xf32>
    %149 = vector.shape_cast %148 : vector<8x128xf32> to vector<8x1x128xf32>
    %150 = vector.broadcast %149 : vector<8x1x128xf32> to vector<8x32x128xf32>
    %151 = arith.mulf %22, %150 : vector<8x32x128xf32>
    %c0_52 = arith.constant 0 : index
    %c0_53 = arith.constant 0 : index
    %c0_54 = arith.constant 0 : index
    %152 = vector.load %arg5[%c0_52, %c0_53, %c0_54] : memref<8x32x128xf32, #tpu.memory_space<vmem>>, vector<8x32x128xf32>
    tpu.vector_store %arg5[%c0_52, %c0_53, %c0_54], %151 {strides = array<i32>} : memref<8x32x128xf32, #tpu.memory_space<vmem>>, vector<8x32x128xf32>,
    return
  }
  func.func @transform_0(%arg0: i32) -> (i32, i32, i32) {
    %c0_i32 = arith.constant 0 : i32
    %c0_i32_0 = arith.constant 0 : i32
    %c0_i32_1 = arith.constant 0 : i32
    return %arg0, %c0_i32, %c0_i32_0 : i32, i32, i32
  }
  func.func @transform_1(%arg0: i32) -> (i32, i32) {
    %c0_i32 = arith.constant 0 : i32
    %c0_i32_0 = arith.constant 0 : i32
    %c0_i32_1 = arith.constant 0 : i32
    return %c0_i32, %c0_i32_0 : i32, i32
  }
  func.func @transform_2(%arg0: i32) -> (i32, i32) {
    %c0_i32 = arith.constant 0 : i32
    %c0_i32_0 = arith.constant 0 : i32
    %c0_i32_1 = arith.constant 0 : i32
    return %c0_i32, %c0_i32_0 : i32, i32
  }
  func.func @transform_3(%arg0: i32) -> (i32, i32) {
    %c0_i32 = arith.constant 0 : i32
    %c0_i32_0 = arith.constant 0 : i32
    %c0_i32_1 = arith.constant 0 : i32
    return %c0_i32, %c0_i32_0 : i32, i32
  }
  func.func @transform_4(%arg0: i32) -> (i32, i32, i32) {
    %c0_i32 = arith.constant 0 : i32
    %c0_i32_0 = arith.constant 0 : i32
    %c0_i32_1 = arith.constant 0 : i32
    return %arg0, %c0_i32, %c0_i32_0 : i32, i32, i32
  }
}

</mosaic_0001>

<bundles_post_ra>
// kernel: tpu_custom_call.1
= control target key start
LH: loop header
LB: loop body
LE: loop exit
PB: predicated region body
PF: predicated region fallthrough
CT: control target
= control target key end

     0   :  { %9 = vsyncpa [#allocation3], 0  ;;  %s2309_s0 = inlined_call_operand.hbm [shape: f32[8,32,128], index: 0, kind: input, shape index: {}]   ;;  %s2310_s1 = inlined_call_operand.vmem [shape: f32[32,2], index: 1, kind: input, shape index: {}]   ;;  %s2311_s2 = inlined_call_operand.vmem [shape: f32[2,32], index: 2, kind: input, shape index: {}]   ;;  %s2312_s3 = inlined_call_operand.vmem [shape: f32[2,7], index: 3, kind: input, shape index: {}]   ;;  %s2313_s4 = inlined_call_operand.hbm [shape: f32[8,32,128], index: 4, kind: output, shape index: {}]  }
   0x1   :  { %10 = vsyncpa [#allocation5], 0 }
   0x2   :  { %11 = vsyncpa [#allocation4], 0  ;;  %s1608_s15 = smov [#allocation2]   ;;  %s34_s19 = sshll.u32 %s2312_s3, 4  ;;  %s35_s19 = int_to_ptr.vmem [resolvable:$true] %s34_s19 }
   0x3   :  { %s17_s16 = sshll.u32 %s1608_s15, 4  ;;  %s1546_s22 = scalar_lea.hbm %s2309_s0, 4096  ;;  %s18_s16 = int_to_ptr.vmem [resolvable:$true] %s17_s16 }
   0x4   :  { %p1547_p0 = scmp.ne.s32.totalorder %s2309_s0, %s1546_s22  ;;  %p1550_p1 = scmp.lt.u32.totalorder %s1546_s22, %s2309_s0 }
   0x6   :  { %p1552_p2 = pnand %p1550_p1, %p1547_p0 }
   0x8   :  { %1555 = shalt.err (!%p1552_p2)
}
   0x9   :  { %s1556_s27 = scalar_lea.vmem %s18_s16, 4096  ;;  %p1561_p4 = scmp.lt.s32.totalorder %s18_s16, %s18_s16 }
   0xa   :  { %p1557_p3 = scmp.ne.s32.totalorder %s18_s16, %s1556_s27  ;;  %p1562_p5 = scmp.lt.s32.totalorder %s1556_s27, %s1556_s27 }
   0xc   :  { %p1563_p6 = por %p1562_p5, %p1561_p4 }
   0xe   :  { %p1564_p7 = pnand %p1563_p6, %p1557_p3 }
  0x10   :  { %1567 = shalt.err (!%p1564_p7)
}
  0x11   :  { %s1609_s3 = smov 128   ;;  %s1610_s28 = smov 8  }
  0x12   :  { %23 = dma.hbm_to_vmem [thread:$0]  %s2309_s0, 4096, %s18_s16, [#allocation3], %s1609_s3, %s1609_s3, %s1610_s28  }
  0x13   :  { %s1568_s5 = scalar_lea.vmem %s35_s19, 32  ;;  %p1573_p9 = scmp.lt.s32.totalorder %s35_s19, %s35_s19 }
  0x14   :  { %p1569_p8 = scmp.ne.s32.totalorder %s35_s19, %s1568_s5  ;;  %p1574_p10 = scmp.lt.s32.totalorder %s1568_s5, %s1568_s5 }
  0x16   :  { %p1575_p11 = por %p1574_p10, %p1573_p9 }
  0x18   :  { %p1576_p12 = pnand %p1575_p11, %p1569_p8 }
  0x1a   :  { %1579 = shalt.err (!%p1576_p12)
}
  0x1b   :  { %s1611_s6 = smov [#allocation6]  }
  0x1c   :  { %37 = dma.vmem_to_smem %s35_s19, 32, %s1611_s6, [#allocation5]  }
  0x1d   :  { %1602 = dma.done.wait [#allocation3], 4096  }
  0x1e   :  { %1603 = vsyncadd [#allocation3], 4294963200 }
  0x1f   :  { %1604 = dma.done.wait [#allocation5], 32  }
  0x20   :  { %1605 = vsyncadd [#allocation5], 4294967264 }
  0x21   :  { %44 = sfence }
  0x22   :  { %v1663_v0 = vld [vmem:[#allocation2 + $0x20] sm:$0xff]  ;;  %v1669_v2 = vld [vmem:[#allocation2 + $0x28] sm:$0xff]  ;;  %v1675_v4 = vld [vmem:[#allocation2 + $0x30] sm:$0xff]  ;;  %v270_v42 = vlaneseq  ;;  %vm281_vm0 = vcmask 130112   ;;  %vm288_vm1 = vcmask 195712   ;;  %vm295_vm2 = vcmask 261312  }
  0x23   :  { %v1665_v1 = vld [vmem:[#allocation2] sm:$0xff]  ;;  %85 = vadd.xlane.f32.xlu1 %v1663_v0  ;;  %v1671_v3 = vld [vmem:[#allocation2 + $0x8] sm:$0xff]  ;;  %v1677_v5 = vld [vmem:[#allocation2 + $0x10] sm:$0xff]  ;;  %vm430_vm3 = vcmask 1041409   ;;  %vm432_vm4 = vcmask 1042434   ;;  %vm434_vm5 = vcmask 1043459  }
  0x24   :  { %77 = vadd.xlane.f32.xlu0 %v1665_v1  ;;  %v1681_v6 = vld [vmem:[#allocation2 + $0x48] sm:$0xff]  ;;  %v1683_v7 = vld [vmem:[#allocation2 + $0x40] sm:$0xff]  ;;  %v1687_v8 = vld [vmem:[#allocation2 + $0x38] sm:$0xff]  ;;  %v1803_v45 = vand.u32 127, %v270_v42  ;;  %v1805_v46 = vshrl.u32 %v270_v42, 7  ;;  %vm436_vm6 = vcmask 1044484  }
  0x25   :  { %v1689_v9 = vld [vmem:[#allocation2 + $0x18] sm:$0xff]  ;;  %v1693_v10 = vld [vmem:[#allocation2 + $0x60] sm:$0xff]  ;;  %v1695_v11 = vld [vmem:[#allocation2 + $0x50] sm:$0xff]  ;;  %vm438_vm7 = vcmask 1045509   ;;  %vm440_vm8 = vcmask 1046534   ;;  %vm442_vm9 = vcmask 1047559  }
  0x26   :  { %v1699_v12 = vld [vmem:[#allocation2 + $0x58] sm:$0xff]  ;;  %v1701_v13 = vld [vmem:[#allocation2 + $0x68] sm:$0xff]  ;;  %v1705_v14 = vld [vmem:[#allocation2 + $0x80] sm:$0xff]  ;;  %2345 = vst [vmem:[#allocation19_spill] sm:$0xff] %v1803_v45  ;;  %v276_v47 = vadd.s32 4294967288, %v1803_v45  ;;  %v283_v50 = vadd.s32 4294967280, %v1803_v45  ;;  %v1812_v52 = vsub.s32 %v1803_v45, %v1805_v46 }
  0x27   :  { %87 = vadd.xlane.f32.xlu1 %v1669_v2  ;;  %v1707_v15 = vld [vmem:[#allocation2 + $0x70] sm:$0xff]  ;;  %v1711_v16 = vld [vmem:[#allocation2 + $0x88] sm:$0xff]  ;;  %v1717_v17 = vld [vmem:[#allocation2 + $0x78] sm:$0xff]  ;;  %v290_v51 = vadd.s32 4294967272, %v1803_v45  ;;  %vm639_vm10 = vcmask 261120   ;;  %vm729_vm11 = vcmask 1041408  }
  0x28   :  { %79 = vadd.xlane.f32.xlu0 %v1671_v3  ;;  %v1721_v18 = vld [vmem:[#allocation2 + $0xa0] sm:$0xff]  ;;  %v1723_v19 = vld [vmem:[#allocation2 + $0x90] sm:$0xff]  ;;  %v1727_v20 = vld [vmem:[#allocation2 + $0xa8] sm:$0xff]  ;;  %v1815_v53 = vsub.s32 %v276_v47, %v1805_v46  ;;  %v1818_v58 = vsub.s32 %v283_v50, %v1805_v46  ;;  %vm722_vm12 = vcmask 15360   ;;  %s1613_s15 = smov 2   ;;  %s1614_s16 = smov 1  }
  0x29   :  { %v1733_v21 = vld [vmem:[#allocation2 + $0x98] sm:$0xff]  ;;  %v1737_v22 = vld [vmem:[#allocation2 + $0xc0] sm:$0xff]  ;;  %v1739_v23 = vld [vmem:[#allocation2 + $0xb0] sm:$0xff]  ;;  %v1821_v61 = vsub.s32 %v290_v51, %v1805_v46  ;;  %s1615_s17 = smov 127   ;;  %s1616_s18 = smov 126  }
  0x2a   :  { %v1743_v24 = vld [vmem:[#allocation2 + $0xc8] sm:$0xff]  ;;  %v1751_v25 = vld [vmem:[#allocation2 + $0xd0] sm:$0xff]  ;;  %v1753_v26 = vld [vmem:[#allocation2 + $0xb8] sm:$0xff]  ;;  %s1617_s19 = smov 125   ;;  %s1481_s20 = sld [smem:[#allocation6 + $0x81]] }
  0x2b   :  { %89 = vadd.xlane.f32.xlu1 %v1675_v4  ;;  %2337 = vst [vmem:[#allocation11_spill] sm:$0xff] %v1743_v24  ;;  %2338 = vst [vmem:[#allocation12_spill] sm:$0xff] %v1751_v25  ;;  %v1757_v27 = vld [vmem:[#allocation2 + $0xe8] sm:$0xff]  ;;  %v1759_v28 = vld [vmem:[#allocation2 + $0xe0] sm:$0xff]  ;;  %s1480_s21 = sld [smem:[#allocation6 + $0x1]]  ;;  %s2197_s22 = sld [smem:[#allocation6 + $0x80]] }
  0x2c   :  { %81 = vadd.xlane.f32.xlu0 %v1677_v5  ;;  %2339 = vst [vmem:[#allocation13_spill] sm:$0xff] %v1753_v26  ;;  %2340 = vst [vmem:[#allocation14_spill] sm:$0xff] %v1757_v27  ;;  %v1767_v29 = vld [vmem:[#allocation2 + $0xf0] sm:$0xff]  ;;  %v1769_v30 = vld [vmem:[#allocation2 + $0xd8] sm:$0xff]  ;;  %s2199_s23 = sld [smem:[#allocation6]]  ;;  %s2201_s24 = sld [smem:[#allocation6 + $0x82]] }
  0x2d   :  { %2341 = vst [vmem:[#allocation15_spill] sm:$0xff] %v1759_v28  ;;  %2342 = vst [vmem:[#allocation16_spill] sm:$0xff] %v1767_v29  ;;  %v1777_v31 = vld [vmem:[#allocation2 + $0xf8] sm:$0xff]  ;;  %v635_v32 = vld [vmem:[%s2310_s1] sm:$0xff]  ;;  %s2203_s25 = sld [smem:[#allocation6 + $0x2]]  ;;  %s2207_s26 = sld [smem:[#allocation6 + $0x83]] }
  0x2e   :  { %2343 = vst [vmem:[#allocation17_spill] sm:$0xff] %v1769_v30  ;;  %2344 = vst [vmem:[#allocation18_spill] sm:$0xff] %v1777_v31  ;;  %v636_v33 = vld [vmem:[%s2310_s1 + $0x8] sm:$0xff]  ;;  %v637_v35 = vld [vmem:[%s2310_s1 + $0x10] sm:$0xff]  ;;  %s2209_s27 = sld [smem:[#allocation6 + $0x3]]  ;;  %s2214_s29 = sld [smem:[#allocation6 + $0x84]] }
  0x2f   :  { %95 = vadd.xlane.f32.xlu1 %v1681_v6  ;;  %v1518_v34 = vpack.c.bf16 %v636_v33, %v635_v32  ;;  %v638_v36 = vld [vmem:[%s2310_s1 + $0x18] sm:$0xff]  ;;  %s2217_s30 = sld [smem:[#allocation6 + $0x4]]  ;;  %s2222_s5 = sld [smem:[#allocation6 + $0x85]] }
  0x30   :  { %93 = vadd.xlane.f32.xlu0 %v1683_v7  ;;  %v1522_v37 = vpack.c.bf16 %v638_v36, %v637_v35  ;;  %s2224_s6 = sld [smem:[#allocation6 + $0x5]]  ;;  %s2228_s0 = sld [smem:[#allocation6 + $0x86]] }
  0x31   :  { %1519 = vmatprep.subr.bf16.mxu0 %v1518_v34  ;;  %s2233_s7 = sld [smem:[#allocation6 + $0x6]]  ;;  %s1619_s8 = smov [#allocation7]  }
  0x32   :  { %1521 = vmatpush3.bf16.msra.mxu0 %v1518_v34  ;;  %s1460_s9 = sshll.u32 %s1619_s8, 4  ;;  %s1461_s9 = int_to_ptr.vmem [resolvable:$true] %s1460_s9 }
  0x33   :  { %91 = vadd.xlane.f32.xlu1 %v1687_v8  ;;  %1523 = vmatprep.subr.bf16.mxu0 %v1522_v37  ;;  %s1580_s10 = scalar_lea.vmem %s1461_s9, 4096  ;;  %p1585_p0 = scmp.lt.s32.totalorder %s1461_s9, %s1461_s9 }
  0x34   :  { %83 = vadd.xlane.f32.xlu0 %v1689_v9  ;;  %p1581_p13 = scmp.ne.s32.totalorder %s1461_s9, %s1580_s10  ;;  %p1586_p1 = scmp.lt.s32.totalorder %s1580_s10, %s1580_s10 }
  0x36   :  { %1525 = vmatpush3.bf16.msra.mxu0 %v1522_v37  ;;  %p1587_p2 = por %p1586_p1, %p1585_p0 }
  0x37   :  { %101 = vadd.xlane.f32.xlu1 %v1693_v10 }
  0x38   :  { %97 = vadd.xlane.f32.xlu0 %v1695_v11  ;;  %p1588_p3 = pnand %p1587_p2, %p1581_p13 }
  0x3b   :  { %99 = vadd.xlane.f32.xlu1 %v1699_v12 }
  0x3c   :  { %103 = vadd.xlane.f32.xlu0 %v1701_v13 }
  0x3f   :  { %109 = vadd.xlane.f32.xlu1 %v1705_v14 }
  0x40   :  { %105 = vadd.xlane.f32.xlu0 %v1707_v15 }
  0x43   :  { %174 = vmax.xlane.f32.xlu1 %v1665_v1 }
  0x44   :  { %111 = vadd.xlane.f32.xlu0 %v1711_v16 }
  0x47   :  { %182 = vmax.xlane.f32.xlu1 %v1663_v0 }
  0x48   :  { %176 = vmax.xlane.f32.xlu0 %v1671_v3 }
  0x4b   :  { %107 = vadd.xlane.f32.xlu1 %v1717_v17 }
  0x4c   :  { %184 = vmax.xlane.f32.xlu0 %v1669_v2 }
  0x4f   :  { %117 = vadd.xlane.f32.xlu1 %v1721_v18 }
  0x50   :  { %113 = vadd.xlane.f32.xlu0 %v1723_v19 }
  0x53   :  { %178 = vmax.xlane.f32.xlu1 %v1677_v5 }
  0x54   :  { %119 = vadd.xlane.f32.xlu0 %v1727_v20 }
  0x57   :  { %190 = vmax.xlane.f32.xlu1 %v1683_v7 }
  0x58   :  { %186 = vmax.xlane.f32.xlu0 %v1675_v4 }
  0x5b   :  { %115 = vadd.xlane.f32.xlu1 %v1733_v21 }
  0x5c   :  { %192 = vmax.xlane.f32.xlu0 %v1681_v6 }
  0x5f   :  { %125 = vadd.xlane.f32.xlu1 %v1737_v22 }
  0x60   :  { %121 = vadd.xlane.f32.xlu0 %v1739_v23 }
  0x63   :  { %180 = vmax.xlane.f32.xlu1 %v1689_v9 }
  0x64   :  { %127 = vadd.xlane.f32.xlu0 %v1743_v24 }
  0x67   :  { %194 = vmax.xlane.f32.xlu1 %v1695_v11 }
  0x68   :  { %188 = vmax.xlane.f32.xlu0 %v1687_v8 }
  0x6b   :  { %200 = vmax.xlane.f32.xlu1 %v1701_v13 }
  0x6c   :  { %198 = vmax.xlane.f32.xlu0 %v1693_v10 }
  0x6f   :  { %129 = vadd.xlane.f32.xlu1 %v1751_v25 }
  0x70   :  { %123 = vadd.xlane.f32.xlu0 %v1753_v26 }
  0x73   :  { %135 = vadd.xlane.f32.xlu1 %v1757_v27 }
  0x74   :  { %133 = vadd.xlane.f32.xlu0 %v1759_v28 }
  0x77   :  { %202 = vmax.xlane.f32.xlu1 %v1707_v15 }
  0x78   :  { %196 = vmax.xlane.f32.xlu0 %v1699_v12 }
  0x7b   :  { %208 = vmax.xlane.f32.xlu1 %v1711_v16 }
  0x7c   :  { %206 = vmax.xlane.f32.xlu0 %v1705_v14 }
  0x7f   :  { %137 = vadd.xlane.f32.xlu1 %v1767_v29 }
  0x80   :  { %131 = vadd.xlane.f32.xlu0 %v1769_v30 }
  0x83   :  { %210 = vmax.xlane.f32.xlu1 %v1723_v19 }
  0x84   :  { %204 = vmax.xlane.f32.xlu0 %v1717_v17 }
  0x87   :  { %216 = vmax.xlane.f32.xlu1 %v1727_v20 }
  0x88   :  { %214 = vmax.xlane.f32.xlu0 %v1721_v18 }
  0x8b   :  { %212 = vmax.xlane.f32.xlu1 %v1733_v21 }
  0x8c   :  { %139 = vadd.xlane.f32.xlu0 %v1777_v31 }
  0x8f   :  { %222 = vmax.xlane.f32.xlu1 %v1737_v22 }
  0x90   :  { %218 = vmax.xlane.f32.xlu0 %v1739_v23 }
  0x93   :  { %220 = vmax.xlane.f32.xlu1 %v1753_v26 }
  0x94   :  { %224 = vmax.xlane.f32.xlu0 %v1743_v24 }
  0x97   :  { %230 = vmax.xlane.f32.xlu1 %v1759_v28 }
  0x98   :  { %226 = vmax.xlane.f32.xlu0 %v1751_v25 }
  0x9b   :  { %228 = vmax.xlane.f32.xlu1 %v1769_v30 }
  0x9c   :  { %232 = vmax.xlane.f32.xlu0 %v1757_v27 }
  0x9f   :  { %236 = vmax.xlane.f32.xlu1 %v1777_v31 }
  0xa0   :  { %234 = vmax.xlane.f32.xlu0 %v1767_v29 }
  0xb0   :  { %v86_v38 = vpop.xlane.xlu1 %85 }
  0xb1   :  { %v78_v39 = vpop.xlane.xlu0 %77  ;;  %v146_v62 = vmul.f32 0.0078125, %v86_v38 }
  0xb2   :  { %v142_v63 = vmul.f32 0.0078125, %v78_v39 }
  0xb3   :  { %v300_v38 = vrot.slane %v146_v62, %v1812_v52 }
  0xb4   :  { %v88_v40 = vpop.xlane.xlu1 %87  ;;  %v275_v39 = vrot.slane %v142_v63, %v1812_v52 }
  0xb5   :  { %v80_v41 = vpop.xlane.xlu0 %79  ;;  %v147_v54 = vmul.f32 0.0078125, %v88_v40 }
  0xb6   :  { %v143_v55 = vmul.f32 0.0078125, %v80_v41 }
  0xb7   :  { %v304_v36 = vrot.slane %v147_v54, %v1815_v53 }
  0xb8   :  { %v90_v43 = vpop.xlane.xlu1 %89  ;;  %v280_v37 = vrot.slane %v143_v55, %v1815_v53 }
  0xb9   :  { %v82_v44 = vpop.xlane.xlu0 %81  ;;  %v148_v59 = vmul.f32 0.0078125, %v90_v43  ;;  %v305_v51 = vsel %vm281_vm0, %v304_v36, %v300_v38 }
  0xba   :  { %v144_v60 = vmul.f32 0.0078125, %v82_v44  ;;  %v282_v54 = vsel %vm281_vm0, %v280_v37, %v275_v39 }
  0xbb   :  { %v309_v42 = vrot.slane %v148_v59, %v1818_v58 }
  0xbc   :  { %v96_v48 = vpop.xlane.xlu1 %95  ;;  %v287_v43 = vrot.slane %v144_v60, %v1818_v58 }
  0xbd   :  { %v94_v49 = vpop.xlane.xlu0 %93  ;;  %v151_v34 = vmul.f32 0.0078125, %v96_v48  ;;  %v310_v59 = vsel %vm288_vm1, %v309_v42, %v305_v51 }
  0xbe   :  { %v150_v35 = vmul.f32 0.0078125, %v94_v49  ;;  %v289_v60 = vsel %vm288_vm1, %v287_v43, %v282_v54 }
  0xbf   :  { %v323_v49 = vrot.slane %v151_v34, %v1815_v53 }
  0xc0   :  { %v92_v56 = vpop.xlane.xlu1 %91  ;;  %v319_v50 = vrot.slane %v150_v35, %v1812_v52 }
  0xc1   :  { %v84_v57 = vpop.xlane.xlu0 %83  ;;  %v149_v32 = vmul.f32 0.0078125, %v92_v56 }
  0xc2   :  { %v145_v33 = vmul.f32 0.0078125, %v84_v57  ;;  %v324_v35 = vsel %vm281_vm0, %v323_v49, %v319_v50 }
  0xc3   :  { %v314_v47 = vrot.slane %v149_v32, %v1821_v61 }
  0xc4   :  { %v102_v40 = vpop.xlane.xlu1 %101  ;;  %v294_v48 = vrot.slane %v145_v33, %v1821_v61 }
  0xc5   :  { %v98_v41 = vpop.xlane.xlu0 %97  ;;  %v315_v32 = vsel %vm295_vm2, %v314_v47, %v310_v59  ;;  %v154_v34 = vmul.f32 0.0078125, %v102_v40 }
  0xc6   :  { %v152_v44 = vmul.f32 0.0078125, %v98_v41  ;;  %v296_v33 = vsel %vm295_vm2, %v294_v48, %v289_v60 }
  0xc7   :  { %v431_v43 = vsel %vm430_vm3, %v315_v32, %v296_v33  ;;  %v338_v47 = vrot.slane %v154_v34, %v1812_v52 }
  0xc8   :  { %v328_v55 = vrot.slane %v152_v44, %v1818_v58  ;;  %v100_v56 = vpop.xlane.xlu1 %99 }
  0xc9   :  { %v104_v57 = vpop.xlane.xlu0 %103  ;;  %v153_v62 = vmul.f32 0.0078125, %v100_v56 }
  0xca   :  { %v155_v63 = vmul.f32 0.0078125, %v104_v57  ;;  %v329_v37 = vsel %vm288_vm1, %v328_v55, %v324_v35 }
  0xcb   :  { %v333_v36 = vrot.slane %v153_v62, %v1821_v61 }
  0xcc   :  { %v342_v41 = vrot.slane %v155_v63, %v1815_v53  ;;  %v110_v42 = vpop.xlane.xlu1 %109 }
  0xcd   :  { %v106_v44 = vpop.xlane.xlu0 %105  ;;  %v334_v38 = vsel %vm295_vm2, %v333_v36, %v329_v37  ;;  %v158_v48 = vmul.f32 0.0078125, %v110_v42 }
  0xce   :  { %v156_v39 = vmul.f32 0.0078125, %v106_v44  ;;  %v433_v40 = vsel %vm432_vm4, %v334_v38, %v431_v43  ;;  %v343_v50 = vsel %vm281_vm0, %v342_v41, %v338_v47 }
  0xcf   :  { %v357_v57 = vrot.slane %v158_v48, %v1812_v52 }
  0xd0   :  { %v347_v49 = vrot.slane %v156_v39, %v1818_v58  ;;  %v175_v51 = vpop.xlane.xlu1 %174 }
  0xd1   :  { %v112_v54 = vpop.xlane.xlu0 %111  ;;  %v479_v63 = vrot.slane %v175_v51, %v1812_v52 }
  0xd2   :  { %v348_v55 = vsel %vm288_vm1, %v347_v49, %v343_v50  ;;  %v159_v56 = vmul.f32 0.0078125, %v112_v54 }
  0xd4   :  { %v361_v59 = vrot.slane %v159_v56, %v1815_v53  ;;  %v183_v60 = vpop.xlane.xlu1 %182 }
  0xd5   :  { %v177_v62 = vpop.xlane.xlu0 %176  ;;  %v498_v37 = vrot.slane %v183_v60, %v1812_v52 }
  0xd6   :  { %v362_v32 = vsel %vm281_vm0, %v361_v59, %v357_v57  ;;  %v483_v33 = vrot.slane %v177_v62, %v1815_v53 }
  0xd8   :  { %v484_v34 = vsel %vm281_vm0, %v483_v33, %v479_v63  ;;  %v108_v35 = vpop.xlane.xlu1 %107 }
  0xd9   :  { %v185_v36 = vpop.xlane.xlu0 %184  ;;  %v157_v41 = vmul.f32 0.0078125, %v108_v35 }
  0xda   :  { %v502_v42 = vrot.slane %v185_v36, %v1815_v53 }
  0xdb   :  { %v352_v44 = vrot.slane %v157_v41, %v1821_v61 }
  0xdc   :  { %v503_v43 = vsel %vm281_vm0, %v502_v42, %v498_v37  ;;  %v118_v38 = vpop.xlane.xlu1 %117 }
  0xdd   :  { %v114_v39 = vpop.xlane.xlu0 %113  ;;  %v353_v47 = vsel %vm295_vm2, %v352_v44, %v348_v55 }
  0xde   :  { %v435_v48 = vsel %vm434_vm5, %v353_v47, %v433_v40  ;;  %v160_v56 = vmul.f32 0.0078125, %v114_v39 }
  0xe0   :  { %v179_v49 = vpop.xlane.xlu1 %178  ;;  %v366_v63 = vrot.slane %v160_v56, %v1818_v58 }
  0xe1   :  { %v120_v50 = vpop.xlane.xlu0 %119  ;;  %v488_v51 = vrot.slane %v179_v49, %v1818_v58 }
  0xe2   :  { %v367_v36 = vsel %vm288_vm1, %v366_v63, %v362_v32  ;;  %v163_v31 = vmul.f32 0.0078125, %v120_v50 }
  0xe3   :  { %v489_v54 = vsel %vm288_vm1, %v488_v51, %v484_v34 }
  0xe4   :  { %v191_v57 = vpop.xlane.xlu1 %190 }
  0xe5   :  { %v187_v59 = vpop.xlane.xlu0 %186 }
  0xe6   :  { %v507_v60 = vrot.slane %v187_v59, %v1818_v58 }
  0xe8   :  { %v508_v62 = vsel %vm288_vm1, %v507_v60, %v503_v43  ;;  %v116_v33 = vpop.xlane.xlu1 %115 }
  0xe9   :  { %v193_v35 = vpop.xlane.xlu0 %192  ;;  %v161_v55 = vmul.f32 0.0078125, %v116_v33 }
  0xeb   :  { %v371_v40 = vrot.slane %v161_v55, %v1821_v61 }
  0xec   :  { %v126_v37 = vpop.xlane.xlu1 %125 }
  0xed   :  { %v122_v41 = vpop.xlane.xlu0 %121  ;;  %v372_v34 = vsel %vm295_vm2, %v371_v40, %v367_v36  ;;  %v521_v36 = vrot.slane %v193_v35, %v1815_v53 }
  0xee   :  { %v1872_v42 = vsel %vm436_vm6, %v372_v34, %v435_v48  ;;  %v164_v29 = vmul.f32 0.0078125, %v122_v41 }
  0xf0   :  { %v181_v44 = vpop.xlane.xlu1 %180  ;;  %v385_v30 = vrot.slane %v164_v29, %v1818_v58 }
  0xf1   :  { %v128_v39 = vpop.xlane.xlu0 %127  ;;  %v493_v43 = vrot.slane %v181_v44, %v1821_v61  ;;  %v517_v44 = vrot.slane %v191_v57, %v1812_v52 }
  0xf2   :  { %v167_v28 = vmul.f32 0.0078125, %v128_v39 }
  0xf3   :  { %v494_v56 = vsel %vm295_vm2, %v493_v43, %v489_v54 }
  0xf4   :  { %v195_v47 = vpop.xlane.xlu1 %194  ;;  %v399_v25 = vrot.slane %v167_v28, %v1815_v53 }
  0xf5   :  { %v189_v49 = vpop.xlane.xlu0 %188  ;;  %v526_v34 = vrot.slane %v195_v47, %v1818_v58 }
  0xf6   :  { %v512_v51 = vrot.slane %v189_v49, %v1821_v61 }
  0xf8   :  { %v513_v59 = vsel %vm295_vm2, %v512_v51, %v508_v62  ;;  %v1879_v60 = vpop.xlane.xlu1 %200  ;;  %v522_v62 = vsel %vm281_vm0, %v521_v36, %v517_v44  ;;  %v162_v44 = vmul.f32 0.0078125, %v118_v38 }
  0xf9   :  { %v628_v32 = vsel %vm430_vm3, %v513_v59, %v494_v56  ;;  %v1881_v63 = vpop.xlane.xlu0 %198  ;;  %v527_v51 = vsel %vm288_vm1, %v526_v34, %v522_v62  ;;  %v166_v62 = vmul.f32 0.0078125, %v126_v37 }
  0xfa   :  { %v376_v26 = vrot.slane %v162_v44, %v1812_v52 }
  0xfb   :  { %v395_v37 = vrot.slane %v166_v62, %v1812_v52 }
  0xfc   :  { %v130_v48 = vpop.xlane.xlu1 %129 }
  0xfd   :  { %v124_v33 = vpop.xlane.xlu0 %123  ;;  %v168_v34 = vmul.f32 0.0078125, %v130_v48 }
  0xff   :  { %v404_v24 = vrot.slane %v168_v34, %v1818_v58 }
 0x100   :  { %v136_v55 = vpop.xlane.xlu1 %135 }
 0x101   :  { %v134_v40 = vpop.xlane.xlu0 %133 }
 0x104   :  { %v1886_v49 = vpop.xlane.xlu1 %202 }
 0x105   :  { %v197_v54 = vpop.xlane.xlu0 %196 }
 0x106   :  { %v531_v43 = vrot.slane %v197_v54, %v1821_v61  ;;  %v165_v54 = vmul.f32 0.0078125, %v124_v33 }
 0x108   :  { %v532_v56 = vsel %vm295_vm2, %v531_v43, %v527_v51  ;;  %v1895_v45 = vpop.xlane.xlu1 %208  ;;  %v171_v51 = vmul.f32 0.0078125, %v136_v55  ;;  %v390_v38 = vrot.slane %v165_v54, %v1821_v61  ;;  %v400_v55 = vsel %vm281_vm0, %v399_v25, %v395_v37 }
 0x109   :  { %v1893_v59 = vsel %vm432_vm4, %v532_v56, %v628_v32  ;;  %v1897_v35 = vpop.xlane.xlu0 %206  ;;  %v380_v32 = vrot.slane %v163_v31, %v1815_v53  ;;  %v170_v56 = vmul.f32 0.0078125, %v134_v40  ;;  %v405_v44 = vsel %vm288_vm1, %v404_v24, %v400_v55 }
 0x10a   :  { %v418_v33 = vrot.slane %v171_v51, %v1815_v53  ;;  %v555_v55 = vrot.slane %v1897_v35, %v1812_v52 }
 0x10b   :  { %v381_v31 = vsel %vm281_vm0, %v380_v32, %v376_v26  ;;  %v414_v29 = vrot.slane %v170_v56, %v1812_v52 }
 0x10c   :  { %v138_v47 = vpop.xlane.xlu1 %137  ;;  %v386_v28 = vsel %vm288_vm1, %v385_v30, %v381_v31  ;;  %v536_v31 = vrot.slane %v1881_v63, %v1812_v52 }
 0x10d   :  { %v132_v57 = vpop.xlane.xlu0 %131  ;;  %v172_v50 = vmul.f32 0.0078125, %v138_v47  ;;  %v391_v34 = vsel %vm295_vm2, %v390_v38, %v386_v28  ;;  %v419_v62 = vsel %vm281_vm0, %v418_v33, %v414_v29  ;;  %v559_v28 = vrot.slane %v1895_v45, %v1815_v53 }
 0x10e   :  { %v169_v43 = vmul.f32 0.0078125, %v132_v57  ;;  %v439_v51 = vsel %vm438_vm7, %v391_v34, %v1872_v42  ;;  %v545_v42 = vrot.slane %v1886_v49, %v1818_v58 }
 0x10f   :  { %v423_v40 = vrot.slane %v172_v50, %v1818_v58 }
 0x110   :  { %v1899_v27 = vpop.xlane.xlu1 %210  ;;  %v409_v48 = vrot.slane %v169_v43, %v1821_v61 }
 0x111   :  { %v1901_v36 = vpop.xlane.xlu0 %204  ;;  %v424_v32 = vsel %vm288_vm1, %v423_v40, %v419_v62  ;;  %v564_v40 = vrot.slane %v1899_v27, %v1818_v58 }
 0x112   :  { %v410_v26 = vsel %vm295_vm2, %v409_v48, %v405_v44  ;;  %v540_v48 = vrot.slane %v1879_v60, %v1815_v53  ;;  %v550_v60 = vrot.slane %v1901_v36, %v1821_v61 }
 0x113   :  { %v441_v56 = vsel %vm440_vm8, %v410_v26, %v439_v51 }
 0x114   :  { %v217_v41 = vpop.xlane.xlu1 %216  ;;  %v541_v45 = vsel %vm281_vm0, %v540_v48, %v536_v31 }
 0x115   :  { %v215_v39 = vpop.xlane.xlu0 %214  ;;  %v546_v36 = vsel %vm288_vm1, %v545_v42, %v541_v45 }
 0x116   :  { %v574_v63 = vrot.slane %v215_v39, %v1812_v52 }
 0x118   :  { %v213_v47 = vpop.xlane.xlu1 %212 }
 0x119   :  { %v140_v57 = vpop.xlane.xlu0 %139  ;;  %v569_v44 = vrot.slane %v213_v47, %v1821_v61 }
 0x11a   :  { %v173_v54 = vmul.f32 0.0078125, %v140_v57  ;;  %v578_v57 = vrot.slane %v217_v41, %v1815_v53  ;;  %v560_v41 = vsel %vm281_vm0, %v559_v28, %v555_v55 }
 0x11b   :  { %v565_v62 = vsel %vm288_vm1, %v564_v40, %v560_v41 }
 0x11c   :  { %v428_v43 = vrot.slane %v173_v54, %v1821_v61  ;;  %v223_v30 = vpop.xlane.xlu1 %222  ;;  %v570_v51 = vsel %vm295_vm2, %v569_v44, %v565_v62 }
 0x11d   :  { %v219_v25 = vpop.xlane.xlu0 %218  ;;  %v593_v39 = vrot.slane %v223_v30, %v1812_v52 }
 0x11e   :  { %v429_v24 = vsel %vm295_vm2, %v428_v43, %v424_v32  ;;  %v583_v49 = vrot.slane %v219_v25, %v1818_v58  ;;  %v551_v43 = vsel %vm295_vm2, %v550_v60, %v546_v36  ;;  %v579_v25 = vsel %vm281_vm0, %v578_v57, %v574_v63 }
 0x11f   :  { %v443_v50 = vsel %vm442_vm9, %v429_v24, %v441_v56  ;;  %v630_v31 = vsel %vm434_vm5, %v551_v43, %v1893_v59 }
 0x120   :  { %1510 = vmatprep.mubr.msk.f32.mxu0 %vm639_vm10, %v443_v50  ;;  %v221_v38 = vpop.xlane.xlu1 %220  ;;  %v584_v24 = vsel %vm288_vm1, %v583_v49, %v579_v25  ;;  %v631_v28 = vsel %vm436_vm6, %v570_v51, %v630_v31  ;;  %v874_v25 = vsub.s32 3, %v1805_v46  ;;  %v893_v51 = vsub.s32 4, %v1805_v46 }
 0x121   :  { %v225_v37 = vpop.xlane.xlu0 %224  ;;  %v588_v35 = vrot.slane %v221_v38, %v1821_v61 }
 0x122   :  { %v597_v34 = vrot.slane %v225_v37, %v1815_v53 }
 0x123   :  { %v589_v50 = vsel %vm295_vm2, %v588_v35, %v584_v24 }
 0x124   :  { %v231_v33 = vpop.xlane.xlu1 %230  ;;  %v598_v56 = vsel %vm281_vm0, %v597_v34, %v593_v39  ;;  %v632_v40 = vsel %vm438_vm7, %v589_v50, %v631_v28  ;;  %v836_v39 = vsub.s32 1, %v1805_v46 }
 0x125   :  { %v227_v29 = vpop.xlane.xlu0 %226  ;;  %v612_v30 = vrot.slane %v231_v33, %v1812_v52 }
 0x126   :  { %v602_v54 = vrot.slane %v227_v29, %v1818_v58 }
 0x128   :  { %v229_v27 = vpop.xlane.xlu1 %228  ;;  %v603_v38 = vsel %vm288_vm1, %v602_v54, %v598_v56  ;;  %v912_v56 = vsub.s32 5, %v1805_v46 }
 0x129   :  { %v233_v26 = vpop.xlane.xlu0 %232  ;;  %v607_v47 = vrot.slane %v229_v27, %v1821_v61 }
 0x12a   :  { %v616_v32 = vrot.slane %v233_v26, %v1815_v53  ;;  %v1982_v26 = vsub.s32 0, %v1805_v46 }
 0x12b   :  { %v608_v29 = vsel %vm295_vm2, %v607_v47, %v603_v38  ;;  %v855_v47 = vsub.s32 2, %v1805_v46 }
 0x12c   :  { %v237_v48 = vpop.xlane.xlu1 %236  ;;  %v617_v55 = vsel %vm281_vm0, %v616_v32, %v612_v30  ;;  %v633_v60 = vsel %vm440_vm8, %v608_v29, %v632_v40  ;;  %v931_v30 = vsub.s32 6, %v1805_v46 }
 0x12d   :  { %v235_v37 = vpop.xlane.xlu0 %234  ;;  %v626_v42 = vrot.slane %v237_v48, %v1821_v61 }
 0x12e   :  { %v621_v53 = vrot.slane %v235_v37, %v1818_v58  ;;  %v721_v58 = vld [vmem:[%s2311_s2] sm:$0x3]  ;;  %v950_v37 = vsub.s32 7, %v1805_v46  ;;  %s1612_s2 = smov 3  }
 0x12f   :  { %1513 = vmatprep.subr.msk.mxu1 %vm729_vm11, %v721_v58 }
 0x130   :  { %v622_v52 = vsel %vm288_vm1, %v621_v53, %v617_v55  ;;  %1514 = vmatpush3.msk.msra.mxu1 %vm729_vm11, %v721_v58 }
 0x131   :  { %v627_v33 = vsel %vm295_vm2, %v626_v42, %v622_v52 }
 0x132   :  { %v634_v59 = vsel %vm442_vm9, %v627_v33, %v633_v60 }
 0x133   :  { %1511 = vmatmul.mubr.msk.f32.vlgmr.msra.gmra.mrb[0].mxu0 %vm639_vm10, %v634_v59 }
 0x206   :  { %v1512_v61 = vpop.f32.mrb[0].mxu0 }
 0x207   :  { %v710_v57 = vpop.f32.mrb[1].mxu0  ;;  %v720_v44 = vmax.f32 %v1512_v61, 0.0 }
 0x208   :  { %v719_v63 = vmax.f32 %v710_v57, 0.0 }
 0x20a   :  { %1515 = vmatprep.mubr.msk.f32.mxu1 %vm722_vm12, %v719_v63 }
 0x20b   :  { %1516 = vmatmul.mubr.msk.f32.vlgmr.msra.gmra.mrb[0].mxu1 %vm722_vm12, %v720_v44 }
 0x2de   :  { %v1517_v49 = vpop.f32.mrb[0].mxu1 }
 0x2df   :  { %v799_v34 = vpop.f32.mrb[1].mxu1 }
 0x2e0   :  { %v808_v45 = vadd.f32 %v1517_v49, %v799_v34 }
 0x2e2   :  { %v1478_v35 = vmul.f32 -1.442695, %v808_v45 }
 0x2e4   :  { %1538 = vpow2.f32 %v1478_v35 }
 0x2ee   :  { %v1539_v54 = vpop.eup %1538 }
 0x2ef   :  { %v812_v27 = vadd.f32 1.0, %v1539_v54 }
 0x2f1   :  { %1540 = vrcp.f32 %v812_v27 }
 0x2fb   :  { %v1541_v36 = vpop.eup %1540 }
 0x2fc   :  { %v818_v41 = vrot.slane %v1541_v36, %v1982_v26  ;;  %v837_v62 = vrot.slane %v1541_v36, %v836_v39  ;;  %v856_v43 = vrot.slane %v1541_v36, %v855_v47  ;;  %v875_v32 = vrot.slane %v1541_v36, %v874_v25 }
 0x2fd   :  { %v894_v24 = vrot.slane %v1541_v36, %v893_v51  ;;  %v913_v50 = vrot.slane %v1541_v36, %v912_v56  ;;  %v932_v38 = vrot.slane %v1541_v36, %v931_v30  ;;  %v951_v48 = vrot.slane %v1541_v36, %v950_v37 }
 0x2fe   :  { %824 = vbcast.lane.b32.xlu1 %v818_v41, 264  ;;  %820 = vbcast.lane.b32.xlu0 %v818_v41, 256 }
 0x302   :  { %839 = vbcast.lane.b32.xlu1 %v837_v62, 256  ;;  %858 = vbcast.lane.b32.xlu0 %v856_v43, 256 }
 0x306   :  { %843 = vbcast.lane.b32.xlu1 %v837_v62, 264  ;;  %828 = vbcast.lane.b32.xlu0 %v818_v41, 272 }
 0x30a   :  { %862 = vbcast.lane.b32.xlu1 %v856_v43, 264  ;;  %877 = vbcast.lane.b32.xlu0 %v875_v32, 256 }
 0x30e   :  { %847 = vbcast.lane.b32.xlu1 %v837_v62, 272  ;;  %866 = vbcast.lane.b32.xlu0 %v856_v43, 272 }
 0x312   :  { %881 = vbcast.lane.b32.xlu1 %v875_v32, 264  ;;  %900 = vbcast.lane.b32.xlu0 %v894_v24, 264 }
 0x316   :  { %896 = vbcast.lane.b32.xlu1 %v894_v24, 256  ;;  %851 = vbcast.lane.b32.xlu0 %v837_v62, 280 }
 0x31a   :  { %832 = vbcast.lane.b32.xlu1 %v818_v41, 280  ;;  %915 = vbcast.lane.b32.xlu0 %v913_v50, 256 }
 0x31e   :  { %885 = vbcast.lane.b32.xlu1 %v875_v32, 272  ;;  %870 = vbcast.lane.b32.xlu0 %v856_v43, 280 }
 0x322   :  { %919 = vbcast.lane.b32.xlu1 %v913_v50, 264  ;;  %934 = vbcast.lane.b32.xlu0 %v932_v38, 256 }
 0x326   :  { %904 = vbcast.lane.b32.xlu1 %v894_v24, 272  ;;  %889 = vbcast.lane.b32.xlu0 %v875_v32, 280 }
 0x32a   :  { %938 = vbcast.lane.b32.xlu1 %v932_v38, 264  ;;  %953 = vbcast.lane.b32.xlu0 %v951_v48, 256 }
 0x32e   :  { %923 = vbcast.lane.b32.xlu1 %v913_v50, 272  ;;  %908 = vbcast.lane.b32.xlu0 %v894_v24, 280 }
 0x332   :  { %957 = vbcast.lane.b32.xlu1 %v951_v48, 264  ;;  %927 = vbcast.lane.b32.xlu0 %v913_v50, 280 }
 0x336   :  { %942 = vbcast.lane.b32.xlu1 %v932_v38, 272  ;;  %946 = vbcast.lane.b32.xlu0 %v932_v38, 280 }
 0x33a   :  { %961 = vbcast.lane.b32.xlu1 %v951_v48, 272 }
 0x33e   :  { %965 = vbcast.lane.b32.xlu1 %v951_v48, 280 }
 0x370   :  { %v825_v31 = vpop.permute.xlu1 %824  ;;  %v821_v29 = vpop.permute.xlu0 %820 }
 0x371   :  { %v2010_v54 = vmul.f32 %v825_v31, %v1671_v3 }
 0x374   :  { %v840_v53 = vpop.permute.xlu1 %839  ;;  %v859_v42 = vpop.permute.xlu0 %858 }
 0x375   :  { %v1996_v57 = vmul.f32 %v840_v53, %v1663_v0  ;;  %v2013_v0 = vmul.f32 %v821_v29, %v1665_v1  ;;  %v2036_v48 = vmul.f32 %v859_v42, %v1683_v7 }
 0x377   :  { %v1080_v1 = vmax.f32 %v2013_v0, %v2010_v54 }
 0x378   :  { %v844_v28 = vpop.permute.xlu1 %843  ;;  %v829_v55 = vpop.permute.xlu0 %828 }
 0x379   :  { %v1993_v59 = vmul.f32 %v844_v28, %v1669_v2  ;;  %v2018_v36 = vmul.f32 %v829_v55, %v1677_v5 }
 0x37b   :  { %v1008_v44 = vadd.f32 %v1993_v59, %v1996_v57  ;;  %v1089_v49 = vmax.f32 %v1996_v57, %v1993_v59  ;;  %v1081_v51 = vmax.f32 %v1080_v1, %v2018_v36 }
 0x37c   :  { %v863_v40 = vpop.permute.xlu1 %862  ;;  %v878_v52 = vpop.permute.xlu0 %877 }
 0x37d   :  { %v2032_v50 = vmul.f32 %v863_v40, %v1681_v6 }
 0x37f   :  { %v1017_v28 = vadd.f32 %v2032_v50, %v2036_v48  ;;  %v1098_v40 = vmax.f32 %v2036_v48, %v2032_v50 }
 0x380   :  { %v848_v33 = vpop.permute.xlu1 %847  ;;  %v867_v60 = vpop.permute.xlu0 %866 }
 0x381   :  { %v1999_v63 = vmul.f32 %v848_v33, %v1675_v4  ;;  %v2039_v31 = vmul.f32 %v867_v60, %v1695_v11  ;;  %v2052_v11 = vmul.f32 %v878_v52, %v1693_v10 }
 0x383   :  { %v1009_v35 = vadd.f32 %v1008_v44, %v1999_v63  ;;  %v1090_v4 = vmax.f32 %v1089_v49, %v1999_v63  ;;  %v1018_v60 = vadd.f32 %v1017_v28, %v2039_v31 }
 0x384   :  { %v882_v58 = vpop.permute.xlu1 %881  ;;  %v901_v61 = vpop.permute.xlu0 %900 }
 0x385   :  { %v2049_v33 = vmul.f32 %v882_v58, %v1701_v13  ;;  %v2063_v13 = vmul.f32 %v901_v61, %v1711_v16 }
 0x387   :  { %v1026_v10 = vadd.f32 %v2049_v33, %v2052_v11 }
 0x388   :  { %v897_v34 = vpop.permute.xlu1 %896  ;;  %v852_v45 = vpop.permute.xlu0 %851 }
 0x389   :  { %v2007_v2 = vmul.f32 %v852_v45, %v1687_v8  ;;  %v999_v8 = vadd.f32 %v2010_v54, %v2013_v0  ;;  %v2056_v49 = vmul.f32 %v897_v34, %v1705_v14 }
 0x38b   :  { %v1010_v27 = vadd.f32 %v1009_v35, %v2007_v2  ;;  %v1091_v41 = vmax.f32 %v1090_v4, %v2007_v2  ;;  %v1000_v43 = vadd.f32 %v999_v8, %v2018_v36  ;;  %v1035_v16 = vadd.f32 %v2063_v13, %v2056_v49 }
 0x38c   :  { %v833_v39 = vpop.permute.xlu1 %832  ;;  %v916_v47 = vpop.permute.xlu0 %915  ;;  %v1116_v8 = vmax.f32 %v2056_v49, %v2063_v13 }
 0x38d   :  { %v1011_v62 = vrot.slane %v1010_v27, 4  ;;  %v2024_v3 = vmul.f32 %v833_v39, %v1689_v9  ;;  %v1092_v25 = vrot.slane %v1091_v41, 4 }
 0x38f   :  { %v1012_v24 = vadd.f32 %v1011_v62, %v1010_v27  ;;  %v1001_v56 = vadd.f32 %v1000_v43, %v2024_v3  ;;  %v1082_v30 = vmax.f32 %v1081_v51, %v2024_v3  ;;  %v1093_v9 = vmax.f32 %v1091_v41, %v1092_v25 }
 0x390   :  { %v886_v32 = vpop.permute.xlu1 %885  ;;  %v871_v5 = vpop.permute.xlu0 %870  ;;  %v2085_v25 = vmul.f32 %v916_v47, %v1721_v18 }
 0x391   :  { %v1013_v29 = vrot.slane %v1012_v24, 2  ;;  %v1002_v53 = vrot.slane %v1001_v56, 4  ;;  %v1083_v55 = vrot.slane %v1082_v30, 4  ;;  %v2044_v6 = vmul.f32 %v871_v5, %v1699_v12 }
 0x392   :  { %v1094_v7 = vrot.slane %v1093_v9, 2  ;;  %v1099_v12 = vmax.f32 %v1098_v40, %v2039_v31  ;;  %v2060_v4 = vmul.f32 %v886_v32, %v1707_v15  ;;  %v1107_v15 = vmax.f32 %v2052_v11, %v2049_v33  ;;  %2346 = vst [vmem:[#allocation20_spill] sm:$0xff] %v2085_v25 }
 0x393   :  { %v1014_v45 = vadd.f32 %v1013_v29, %v1012_v24  ;;  %v1003_v35 = vadd.f32 %v1002_v53, %v1001_v56  ;;  %v1084_v58 = vmax.f32 %v1082_v30, %v1083_v55  ;;  %v1019_v27 = vadd.f32 %v1018_v60, %v2044_v6 }
 0x394   :  { %v920_v38 = vpop.permute.xlu1 %919  ;;  %v935_v37 = vpop.permute.xlu0 %934  ;;  %v1095_v52 = vmax.f32 %v1093_v9, %v1094_v7  ;;  %v1100_v14 = vmax.f32 %v1099_v12, %v2044_v6  ;;  %v1108_v32 = vmax.f32 %v1107_v15, %v2060_v4 }
 0x395   :  { %v1015_v62 = vrot.slane %v1014_v45, 1  ;;  %v1004_v1 = vrot.slane %v1003_v35, 2  ;;  %v1085_v43 = vrot.slane %v1084_v58, 2  ;;  %v1020_v5 = vrot.slane %v1019_v27, 4 }
 0x396   :  { %v1096_v51 = vrot.slane %v1095_v52, 1  ;;  %v1101_v24 = vrot.slane %v1100_v14, 4  ;;  %v2089_v56 = vmul.f32 %v920_v38, %v1727_v20  ;;  %v2099_v40 = vmul.f32 %v935_v37, %v1737_v22 }
 0x397   :  { %v1016_v47 = vadd.f32 %v1015_v62, %v1014_v45  ;;  %v1005_v55 = vadd.f32 %v1004_v1, %v1003_v35  ;;  %v2104_v38 = vmax.f32 %v1084_v58, %v1085_v43  ;;  %v1021_v7 = vadd.f32 %v1020_v5, %v1019_v27  ;;  %v2351_v45 = vld [vmem:[#allocation11_spill] sm:$0xff] }
 0x398   :  { %v905_v42 = vpop.permute.xlu1 %904  ;;  %v890_v44 = vpop.permute.xlu0 %889  ;;  %2347 = vst [vmem:[#allocation21_spill] sm:$0xff] %v2089_v56  ;;  %2349 = vst [vmem:[#allocation23_spill] sm:$0xff] %v2099_v40  ;;  %v1044_v60 = vadd.f32 %v2089_v56, %v2085_v25  ;;  %v2115_v35 = vmax.f32 %v1095_v52, %v1096_v51 }
 0x399   :  { %v2070_v34 = vmul.f32 %v890_v44, %v1717_v17  ;;  %v2079_v61 = vmul.f32 %v905_v42, %v1723_v19  ;;  %v1027_v17 = vadd.f32 %v1026_v10, %v2060_v4  ;;  %v2353_v10 = vld [vmem:[#allocation13_spill] sm:$0xff]  ;;  %v1022_v43 = vrot.slane %v1021_v7, 2 }
 0x39b   :  { %v1028_v19 = vadd.f32 %v1027_v17, %v2070_v34  ;;  %v1036_v29 = vadd.f32 %v1035_v16, %v2079_v61  ;;  %v1117_v53 = vmax.f32 %v1116_v8, %v2079_v61  ;;  %v1109_v28 = vmax.f32 %v1108_v32, %v2070_v34 }
 0x39c   :  { %v939_v41 = vpop.permute.xlu1 %938  ;;  %v2072_v39 = vpop.permute.xlu0 %953  ;;  %v1006_v16 = vrot.slane %v1005_v55, 1  ;;  %v1102_v8 = vmax.f32 %v1100_v14, %v1101_v24  ;;  %v2122_v17 = vmul.f32 0.03125, %v1016_v47  ;;  %v2355_v47 = vld [vmem:[#allocation12_spill] sm:$0xff] }
 0x39d   :  { %v1029_v12 = vrot.slane %v1028_v19, 4  ;;  %v2113_v22 = vmul.f32 %v939_v41, %v2351_v45  ;;  %v1110_v58 = vrot.slane %v1109_v28, 4 }
 0x39e   :  { %v1103_v45 = vrot.slane %v1102_v8, 2 }
 0x39f   :  { %2352 = vst [vmem:[#allocation11_spill] sm:$0xff] %v2113_v22  ;;  %v1030_v5 = vadd.f32 %v1029_v12, %v1028_v19  ;;  %v1053_v52 = vadd.f32 %v2113_v22, %v2099_v40  ;;  %v1111_v24 = vmax.f32 %v1109_v28, %v1110_v58  ;;  %v2359_v58 = vld [vmem:[#allocation14_spill] sm:$0xff] }
 0x3a0   :  { %v924_v30 = vpop.permute.xlu1 %923  ;;  %v909_v9 = vpop.permute.xlu0 %908 }
 0x3a1   :  { %v2096_v18 = vmul.f32 %v909_v9, %v1733_v21  ;;  %v2102_v20 = vmul.f32 %v924_v30, %v1739_v23  ;;  %v1125_v21 = vmax.f32 %v2085_v25, %v2089_v56  ;;  %v1031_v28 = vrot.slane %v1030_v5, 2 }
 0x3a3   :  { %2348 = vst [vmem:[#allocation22_spill] sm:$0xff] %v2096_v18  ;;  %2350 = vst [vmem:[#allocation24_spill] sm:$0xff] %v2102_v20  ;;  %v1037_v42 = vadd.f32 %v1036_v29, %v2096_v18  ;;  %v1118_v44 = vmax.f32 %v1117_v53, %v2096_v18  ;;  %v1045_v62 = vadd.f32 %v1044_v60, %v2102_v20 }
 0x3a4   :  { %v958_v37 = vpop.permute.xlu1 %957  ;;  %v928_v23 = vpop.permute.xlu0 %927  ;;  %v1126_v1 = vmax.f32 %v1125_v21, %v2102_v20  ;;  %v1134_v29 = vmax.f32 %v2099_v40, %v2113_v22  ;;  %v1007_v21 = vadd.f32 %v1006_v16, %v1005_v55 }
 0x3a5   :  { %v1038_v27 = vrot.slane %v1037_v42, 4  ;;  %v2118_v15 = vmul.f32 %v928_v23, %v2353_v10  ;;  %v1119_v32 = vrot.slane %v1118_v44, 4 }
 0x3a7   :  { %2354 = vst [vmem:[#allocation13_spill] sm:$0xff] %v2118_v15  ;;  %v1046_v51 = vadd.f32 %v1045_v62, %v2118_v15  ;;  %v1127_v30 = vmax.f32 %v1126_v1, %v2118_v15  ;;  %v1039_v53 = vadd.f32 %v1038_v27, %v1037_v42  ;;  %v1120_v23 = vmax.f32 %v1118_v44, %v1119_v32  ;;  %v2357_v1 = vld [vmem:[#allocation17_spill] sm:$0xff] }
 0x3a8   :  { %v943_v9 = vpop.permute.xlu1 %942  ;;  %v947_v14 = vpop.permute.xlu0 %946  ;;  %v2140_v15 = vmul.f32 %v958_v37, %v2359_v58  ;;  %v1023_v32 = vadd.f32 %v1022_v43, %v1021_v7  ;;  %v1104_v37 = vmax.f32 %v1102_v8, %v1103_v45  ;;  %v2365_v45 = vld [vmem:[#allocation18_spill] sm:$0xff] }
 0x3a9   :  { %v2132_v60 = vmul.f32 %v943_v9, %v2355_v47  ;;  %v1047_v19 = vrot.slane %v1046_v51, 4  ;;  %v1128_v12 = vrot.slane %v1127_v30, 4  ;;  %v2137_v41 = vmul.f32 %v947_v14, %v2357_v1  ;;  %v2363_v1 = vld [vmem:[#allocation16_spill] sm:$0xff] }
 0x3aa   :  { %2360 = vst [vmem:[#allocation14_spill] sm:$0xff] %v2140_v15  ;;  %v1112_v47 = vrot.slane %v1111_v24, 2  ;;  %v1040_v55 = vrot.slane %v1039_v53, 2  ;;  %v1121_v58 = vrot.slane %v1120_v23, 2 }
 0x3ab   :  { %2356 = vst [vmem:[#allocation12_spill] sm:$0xff] %v2132_v60  ;;  %v1054_v10 = vadd.f32 %v1053_v52, %v2132_v60  ;;  %v1135_v62 = vmax.f32 %v1134_v29, %v2132_v60  ;;  %2358 = vst [vmem:[#allocation17_spill] sm:$0xff] %v2137_v41  ;;  %v1048_v42 = vadd.f32 %v1047_v19, %v1046_v51  ;;  %v2361_v52 = vld [vmem:[#allocation15_spill] sm:$0xff] }
 0x3ac   :  { %v1129_v27 = vmax.f32 %v1127_v30, %v1128_v12  ;;  %v962_v9 = vpop.permute.xlu1 %961  ;;  %v2146_v29 = vmul.f32 %v2072_v39, %v2361_v52  ;;  %v1032_v19 = vadd.f32 %v1031_v28, %v1030_v5  ;;  %v1041_v39 = vadd.f32 %v1040_v55, %v1039_v53 }
 0x3ad   :  { %v1055_v16 = vadd.f32 %v1054_v10, %v2137_v41  ;;  %v1136_v44 = vmax.f32 %v1135_v62, %v2137_v41  ;;  %v1049_v14 = vrot.slane %v1048_v42, 2  ;;  %v2149_v60 = vmul.f32 %v962_v9, %v2363_v1 }
 0x3ae   :  { %2362 = vst [vmem:[#allocation15_spill] sm:$0xff] %v2146_v29  ;;  %v1062_v12 = vadd.f32 %v2140_v15, %v2146_v29  ;;  %v1143_v10 = vmax.f32 %v2146_v29, %v2140_v15  ;;  %v1130_v7 = vrot.slane %v1129_v27, 2  ;;  %v1113_v62 = vmax.f32 %v1111_v24, %v1112_v47 }
 0x3af   :  { %2364 = vst [vmem:[#allocation16_spill] sm:$0xff] %v2149_v60  ;;  %v1056_v51 = vrot.slane %v1055_v16, 4  ;;  %v1137_v30 = vrot.slane %v1136_v44, 4  ;;  %v1050_v22 = vadd.f32 %v1049_v14, %v1048_v42  ;;  %v1024_v5 = vrot.slane %v1023_v32, 1 }
 0x3b0   :  { %v966_v43 = vpop.permute.xlu1 %965  ;;  %v1063_v9 = vadd.f32 %v1062_v12, %v2149_v60  ;;  %v1144_v8 = vmax.f32 %v1143_v10, %v2149_v60  ;;  %v1122_v28 = vmax.f32 %v1120_v23, %v1121_v58  ;;  %v1033_v56 = vrot.slane %v1032_v19, 1 }
 0x3b1   :  { %v1057_v52 = vadd.f32 %v1056_v51, %v1055_v16  ;;  %v1138_v41 = vmax.f32 %v1136_v44, %v1137_v30  ;;  %v2158_v1 = vmul.f32 %v966_v43, %v2365_v45  ;;  %v1131_v15 = vmax.f32 %v1129_v27, %v1130_v7 }
 0x3b2   :  { %v1105_v53 = vrot.slane %v1104_v37, 1  ;;  %v1042_v47 = vrot.slane %v1041_v39, 1  ;;  %v1114_v16 = vrot.slane %v1113_v62, 1  ;;  %v1051_v44 = vrot.slane %v1050_v22, 1 }
 0x3b3   :  { %2366 = vst [vmem:[#allocation18_spill] sm:$0xff] %v2158_v1  ;;  %v1058_v40 = vrot.slane %v1057_v52, 2  ;;  %v1139_v20 = vrot.slane %v1138_v41, 2  ;;  %v1064_v29 = vadd.f32 %v1063_v9, %v2158_v1  ;;  %v1145_v24 = vmax.f32 %v1144_v8, %v2158_v1 }
 0x3b4   :  { %v2367_v30 = vrot.slane %v2104_v38, 1  ;;  %v1025_v58 = vadd.f32 %v1024_v5, %v1023_v32  ;;  %v1123_v12 = vrot.slane %v1122_v28, 1  ;;  %v1034_v27 = vadd.f32 %v1033_v56, %v1032_v19 }
 0x3b5   :  { %v1059_v42 = vadd.f32 %v1058_v40, %v1057_v52  ;;  %v1140_v55 = vmax.f32 %v1138_v41, %v1139_v20  ;;  %v1065_v14 = vrot.slane %v1064_v29, 4  ;;  %v1146_v51 = vrot.slane %v1145_v24, 4 }
 0x3b6   :  { %v1088_v23 = vmax.f32 %v2104_v38, %v2367_v30  ;;  %v1132_v7 = vrot.slane %v1131_v15, 1  ;;  %v1072_v8 = vmul.f32 0.03125, %v1007_v21  ;;  %v1106_v45 = vmax.f32 %v1104_v37, %v1105_v53 }
 0x3b7   :  { %v1060_v10 = vrot.slane %v1059_v42, 1  ;;  %v1066_v43 = vadd.f32 %v1065_v14, %v1064_v29  ;;  %v1147_v9 = vmax.f32 %v1145_v24, %v1146_v51  ;;  %v1043_v1 = vadd.f32 %v1042_v47, %v1041_v39 }
 0x3b8   :  { %v1141_v40 = vrot.slane %v1140_v55, 1  ;;  %v1115_v20 = vmax.f32 %v1113_v62, %v1114_v16  ;;  %v1052_v41 = vadd.f32 %v1051_v44, %v1050_v22  ;;  %v1176_v25 = vsel %vm430_vm3, %v2115_v35, %v1088_v23 }
 0x3b9   :  { %v1067_v52 = vrot.slane %v1066_v43, 2  ;;  %v1148_v60 = vrot.slane %v1147_v9, 2  ;;  %v1074_v18 = vmul.f32 0.03125, %v1025_v58  ;;  %v1124_v38 = vmax.f32 %v1122_v28, %v1123_v12  ;;  %v2368_v58 = vld [vmem:[#allocation19_spill] sm:$0xff] }
 0x3ba   :  { %v1061_v32 = vadd.f32 %v1060_v10, %v1059_v42  ;;  %v1075_v5 = vmul.f32 0.03125, %v1034_v27  ;;  %v1133_v30 = vmax.f32 %v1131_v15, %v1132_v7  ;;  %v1160_v21 = vsel %vm430_vm3, %v2122_v17, %v1072_v8 }
 0x3bb   :  { %v1068_v56 = vadd.f32 %v1067_v52, %v1066_v43  ;;  %v1149_v19 = vmax.f32 %v1147_v9, %v1148_v60  ;;  %v1177_v29 = vsel %vm432_vm4, %v1106_v45, %v1176_v25  ;;  %v1076_v37 = vmul.f32 0.03125, %v1043_v1 }
 0x3bc   :  { %v1142_v62 = vmax.f32 %v1140_v55, %v1141_v40  ;;  %v1178_v22 = vsel %vm434_vm5, %v1115_v20, %v1177_v29  ;;  %v1077_v39 = vmul.f32 0.03125, %v1052_v41  ;;  %v1161_v35 = vsel %vm432_vm4, %v1074_v18, %v1160_v21 }
 0x3bd   :  { %v1069_v24 = vrot.slane %v1068_v56, 1  ;;  %v1150_v53 = vrot.slane %v1149_v19, 1  ;;  %v1179_v28 = vsel %vm436_vm6, %v1124_v38, %v1178_v22  ;;  %v1078_v47 = vmul.f32 0.03125, %v1061_v32 }
 0x3be   :  { %v1162_v15 = vsel %vm434_vm5, %v1075_v5, %v1161_v35  ;;  %v1180_v60 = vsel %vm438_vm7, %v1133_v30, %v1179_v28  ;;  %vm1205_vm13 = vcmp.ge.s32.totalorder %v2368_v58, 2  ;;  %vm1188_vm14 = vcmp.ge.s32.totalorder %v2368_v58, 3 }
 0x3bf   :  { %v1070_v42 = vadd.f32 %v1069_v24, %v1068_v56  ;;  %v1151_v17 = vmax.f32 %v1149_v19, %v1150_v53  ;;  %v1163_v25 = vsel %vm436_vm6, %v1076_v37, %v1162_v15  ;;  %v1181_v1 = vsel %vm440_vm8, %v1142_v62, %v1180_v60 }
 0x3c0   :  { %v1164_v55 = vsel %vm438_vm7, %v1077_v39, %v1163_v25  ;;  %v1215_v10 = vstv %s1481_s20  ;;  %v1211_v7 = vstv %s1480_s21  ;;  %v1198_v43 = vstv %s2197_s22 }
 0x3c1   :  { %v1079_v16 = vmul.f32 0.03125, %v1070_v42  ;;  %v2179_v44 = vsel %vm442_vm9, %v1151_v17, %v1181_v1  ;;  %v1165_v18 = vsel %vm440_vm8, %v1078_v47, %v1164_v55  ;;  %v1194_v9 = vstv %s2199_s23 }
 0x3c2   :  { %1186 = vrot.lane.b32.xlu1 %v2179_v44, %s1612_s2  ;;  %vm1222_vm15 = vcmp.ge.s32.totalorder %v2368_v58, 1  ;;  %v1232_v41 = vstv %s2201_s24  ;;  %v1228_v30 = vstv %s2203_s25  ;;  %vm1247_vm0 = vcmp.lt.s32.totalorder %v2368_v58, 127 }
 0x3c3   :  { %v2184_v14 = vsel %vm442_vm9, %v1079_v16, %v1165_v18  ;;  %v1240_v53 = vstv %s2207_s26  ;;  %v1236_v35 = vstv %s2209_s27  ;;  %vm1264_vm1 = vcmp.lt.s32.totalorder %v2368_v58, 126 }
 0x3c4   :  { %1184 = vrot.lane.b32.xlu0 %v2184_v14, %s1612_s2  ;;  %v1257_v60 = vstv %s2214_s29  ;;  %v1253_v17 = vstv %s2217_s30  ;;  %v1241_v1 = vmul.f32 %v1240_v53, %v2179_v44  ;;  %v1237_v55 = vmul.f32 %v1236_v35, %v2184_v14 }
 0x3c5   :  { %v1274_v18 = vstv %s2222_s5  ;;  %vm1281_vm2 = vcmp.lt.s32.totalorder %v2368_v58, 125 }
 0x3c6   :  { %1203 = vrot.lane.b32.xlu1 %v2179_v44, %s1613_s15 }
 0x3c8   :  { %1201 = vrot.lane.b32.xlu0 %v2184_v14, %s1613_s15 }
 0x3ca   :  { %1220 = vrot.lane.b32.xlu1 %v2179_v44, %s1614_s16 }
 0x3cc   :  { %1218 = vrot.lane.b32.xlu0 %v2184_v14, %s1614_s16 }
 0x3ce   :  { %1245 = vrot.lane.b32.xlu1 %v2179_v44, %s1615_s17 }
 0x3d0   :  { %1243 = vrot.lane.b32.xlu0 %v2184_v14, %s1615_s17 }
 0x3d2   :  { %1262 = vrot.lane.b32.xlu1 %v2179_v44, %s1616_s18 }
 0x3d4   :  { %1260 = vrot.lane.b32.xlu0 %v2184_v14, %s1616_s18 }
 0x3d6   :  { %1279 = vrot.lane.b32.xlu1 %v2179_v44, %s1617_s19  ;;  %v1291_v44 = vstv %s2228_s0 }
 0x3d8   :  { %1277 = vrot.lane.b32.xlu0 %v2184_v14, %s1617_s19 }
 0x434   :  { %v1187_v51 = vpop.permute.xlu1 %1186 }
 0x435   :  { %v1192_v45 = vsel %vm1188_vm14, %v1187_v51, 0.0 }
 0x436   :  { %v1185_v23 = vpop.permute.xlu0 %1184  ;;  %v1199_v56 = vmul.f32 %v1198_v43, %v1192_v45 }
 0x437   :  { %v1191_v40 = vsel %vm1188_vm14, %v1185_v23, 0.0  ;;  %v1270_v23 = vstv %s2224_s6 }
 0x438   :  { %v1204_v12 = vpop.permute.xlu1 %1203  ;;  %v1195_v19 = vmul.f32 %v1194_v9, %v1191_v40 }
 0x439   :  { %v1209_v27 = vsel %vm1205_vm13, %v1204_v12, 0.0 }
 0x43a   :  { %v1202_v8 = vpop.permute.xlu0 %1201  ;;  %v1216_v52 = vmul.f32 %v1215_v10, %v1209_v27 }
 0x43b   :  { %v1208_v20 = vsel %vm1205_vm13, %v1202_v8, 0.0 }
 0x43c   :  { %v1212_v38 = vmul.f32 %v1211_v7, %v1208_v20  ;;  %v1221_v32 = vpop.permute.xlu1 %1220  ;;  %v1217_v62 = vadd.f32 %v1216_v52, %v1199_v56  ;;  %v1287_v20 = vstv %s2233_s7 }
 0x43d   :  { %v1226_v5 = vsel %vm1222_vm15, %v1221_v32, 0.0 }
 0x43e   :  { %v1233_v21 = vmul.f32 %v1232_v41, %v1226_v5  ;;  %v1219_v29 = vpop.permute.xlu0 %1218  ;;  %v1213_v22 = vadd.f32 %v1212_v38, %v1195_v19 }
 0x43f   :  { %v1225_v37 = vsel %vm1222_vm15, %v1219_v29, 0.0 }
 0x440   :  { %v1229_v39 = vmul.f32 %v1228_v30, %v1225_v37  ;;  %v1246_v24 = vpop.permute.xlu1 %1245  ;;  %v1234_v28 = vadd.f32 %v1233_v21, %v1217_v62 }
 0x441   :  { %v1251_v42 = vsel %vm1247_vm0, %v1246_v24, 0.0  ;;  %v1618_v24 = vmov 1966171168  }
 0x442   :  { %v1230_v47 = vadd.f32 %v1229_v39, %v1213_v22  ;;  %v1244_v15 = vpop.permute.xlu0 %1243  ;;  %v1242_v12 = vadd.f32 %v1241_v1, %v1234_v28  ;;  %v1258_v10 = vmul.f32 %v1257_v60, %v1251_v42  ;;  %v1304_v53 = vunpack.c.l.s4 %v1618_v24 }
 0x443   :  { %v1250_v25 = vsel %vm1247_vm0, %v1244_v15, 0.0 }
 0x444   :  { %v1263_v16 = vpop.permute.xlu1 %1262  ;;  %v1238_v27 = vadd.f32 %v1237_v55, %v1230_v47  ;;  %v1254_v7 = vmul.f32 %v1253_v17, %v1250_v25  ;;  %v1259_v41 = vadd.f32 %v1258_v10, %v1242_v12  ;;  %v1305_v35 = vunpack.c.0.s8 %v1304_v53  ;;  %v2379_v53 = vld [vmem:[#allocation14_spill] sm:$0xff] }
 0x445   :  { %v1268_v51 = vsel %vm1264_vm1, %v1263_v16, 0.0 }
 0x446   :  { %v1261_v43 = vpop.permute.xlu0 %1260  ;;  %v1275_v8 = vmul.f32 %v1274_v18, %v1268_v51  ;;  %v1255_v52 = vadd.f32 %v1254_v7, %v1238_v27  ;;  %v1308_v28 = vsub.s32 %v1305_v35, %v1805_v46 }
 0x447   :  { %v1267_v9 = vsel %vm1264_vm1, %v1261_v43, 0.0 }
 0x448   :  { %v1271_v14 = vmul.f32 %v1270_v23, %v1267_v9  ;;  %v1280_v45 = vpop.permute.xlu1 %1279  ;;  %v1276_v30 = vadd.f32 %v1275_v8, %v1259_v41 }
 0x449   :  { %v1285_v40 = vsel %vm1281_vm2, %v1280_v45, 0.0 }
 0x44a   :  { %v1292_v38 = vmul.f32 %v1291_v44, %v1285_v40  ;;  %v1278_v32 = vpop.permute.xlu0 %1277  ;;  %v1272_v56 = vadd.f32 %v1271_v14, %v1255_v52 }
 0x44b   :  { %v1284_v5 = vsel %vm1281_vm2, %v1278_v32, 0.0 }
 0x44c   :  { %v1288_v19 = vmul.f32 %v1287_v20, %v1284_v5  ;;  %v1293_v21 = vadd.f32 %v1292_v38, %v1276_v30  ;;  %v2373_v30 = vld [vmem:[#allocation13_spill] sm:$0xff] }
 0x44e   :  { %v1289_v29 = vadd.f32 %v1288_v19, %v1272_v56  ;;  %v2374_v19 = vld [vmem:[#allocation23_spill] sm:$0xff] }
 0x450   :  { %v1294_v37 = vadd.f32 %v1293_v21, %v1289_v29  ;;  %v2376_v29 = vld [vmem:[#allocation12_spill] sm:$0xff] }
 0x452   :  { %v1492_v62 = vmul.f32 -1.442695, %v1294_v37 }
 0x454   :  { %1542 = vpow2.f32 %v1492_v62  ;;  %v2377_v62 = vld [vmem:[#allocation17_spill] sm:$0xff] }
 0x45e   :  { %v1543_v22 = vpop.eup %1542 }
 0x45f   :  { %v1298_v39 = vadd.f32 1.0, %v1543_v22 }
 0x461   :  { %1544 = vrcp.f32 %v1298_v39  ;;  %v2378_v39 = vld [vmem:[#allocation15_spill] sm:$0xff] }
 0x46b   :  { %v1545_v47 = vpop.eup %1544 }
 0x46c   :  { %v1302_v15 = vcombine.high %v1545_v47, %v1545_v47  ;;  %v1309_v58 = vrot.slane %v1545_v47, %v1308_v28 }
 0x46e   :  { %v1316_v60 = vrot.slane %v1302_v15, %v1308_v28  ;;  %v1317_v42 = vcombine.high %v1309_v58, %v1309_v58  ;;  %v1325_v17 = vrot.slane %v1309_v58, %v1308_v28  ;;  %v2381_v15 = vld [vmem:[#allocation18_spill] sm:$0xff] }
 0x470   :  { %v1318_v25 = vcombine.high %v1316_v60, %v1316_v60  ;;  %v1332_v1 = vrot.slane %v1316_v60, %v1308_v28  ;;  %v1339_v55 = vrot.slane %v1317_v42, %v1308_v28  ;;  %v1347_v16 = vcombine.high %v1325_v17, %v1325_v17 }
 0x471   :  { %v1354_v18 = vrot.slane %v1325_v17, %v1982_v26 }
 0x472   :  { %v1346_v51 = vrot.slane %v1318_v25, %v1308_v28  ;;  %v1348_v23 = vcombine.high %v1332_v1, %v1332_v1  ;;  %v1349_v12 = vcombine.high %v1339_v55, %v1339_v55  ;;  %v1358_v10 = vrot.slane %v1339_v55, %v1982_v26  ;;  %v2380_v28 = vld [vmem:[#allocation16_spill] sm:$0xff] }
 0x473   :  { %v1362_v27 = vrot.slane %v1347_v16, %v1982_v26  ;;  %v1370_v46 = vrot.slane %v1332_v1, %v1982_v26  ;;  %v1391_v7 = vmul.f32 %v1354_v18, %v2013_v0  ;;  %v1392_v43 = vmul.f32 %v1354_v18, %v2010_v54 }
 0x474   :  { %v1350_v9 = vcombine.high %v1346_v51, %v1346_v51  ;;  %v1366_v44 = vrot.slane %v1349_v12, %v1982_v26  ;;  %v1374_v8 = vrot.slane %v1346_v51, %v1982_v26  ;;  %v1378_v14 = vrot.slane %v1348_v23, %v1982_v26 }
 0x475   :  { %v1393_v45 = vmul.f32 %v1354_v18, %v2018_v36  ;;  %v1394_v40 = vmul.f32 %v1354_v18, %v2024_v3  ;;  %v1395_v20 = vmul.f32 %v1358_v10, %v1996_v57  ;;  %v1396_v41 = vmul.f32 %v1358_v10, %v1993_v59  ;;  %1423 = vst [vmem:[#allocation7] sm:$0xff] %v1391_v7 }
 0x476   :  { %1424 = vst [vmem:[#allocation7 + $0x8] sm:$0xff] %v1392_v43  ;;  %v1382_v0 = vrot.slane %v1350_v9, %v1982_v26  ;;  %v1397_v54 = vmul.f32 %v1358_v10, %v1999_v63  ;;  %v1398_v52 = vmul.f32 %v1358_v10, %v2007_v2  ;;  %v1399_v38 = vmul.f32 %v1362_v27, %v2036_v48 }
 0x477   :  { %v1400_v32 = vmul.f32 %v1362_v27, %v2032_v50  ;;  %v1401_v36 = vmul.f32 %v1362_v27, %v2039_v31  ;;  %v1402_v3 = vmul.f32 %v1362_v27, %v2044_v6  ;;  %v1403_v57 = vmul.f32 %v1366_v44, %v2052_v11  ;;  %1425 = vst [vmem:[#allocation7 + $0x10] sm:$0xff] %v1393_v45  ;;  %v2369_v31 = vld [vmem:[#allocation22_spill] sm:$0xff]  ;;  %v2370_v11 = vld [vmem:[#allocation20_spill] sm:$0xff] }
 0x478   :  { %1426 = vst [vmem:[#allocation7 + $0x18] sm:$0xff] %v1394_v40  ;;  %1427 = vst [vmem:[#allocation7 + $0x20] sm:$0xff] %v1395_v20  ;;  %v1404_v26 = vmul.f32 %v1366_v44, %v2049_v33  ;;  %v1405_v59 = vmul.f32 %v1366_v44, %v2060_v4  ;;  %v1406_v63 = vmul.f32 %v1366_v44, %v2070_v34  ;;  %v2371_v33 = vld [vmem:[#allocation21_spill] sm:$0xff] }
 0x479   :  { %1428 = vst [vmem:[#allocation7 + $0x28] sm:$0xff] %v1396_v41  ;;  %v1407_v2 = vmul.f32 %v1370_v46, %v2056_v49  ;;  %1429 = vst [vmem:[#allocation7 + $0x30] sm:$0xff] %v1397_v54  ;;  %v1408_v50 = vmul.f32 %v1370_v46, %v2063_v13  ;;  %v1409_v48 = vmul.f32 %v1370_v46, %v2079_v61  ;;  %v2372_v49 = vld [vmem:[#allocation24_spill] sm:$0xff]  ;;  %v2375_v61 = vld [vmem:[#allocation11_spill] sm:$0xff] }
 0x47a   :  { %1430 = vst [vmem:[#allocation7 + $0x38] sm:$0xff] %v1398_v52  ;;  %1431 = vst [vmem:[#allocation7 + $0x40] sm:$0xff] %v1399_v38  ;;  %v1410_v6 = vmul.f32 %v1370_v46, %v2369_v31  ;;  %v1411_v5 = vmul.f32 %v1374_v8, %v2370_v11  ;;  %v1412_v4 = vmul.f32 %v1374_v8, %v2371_v33 }
 0x47b   :  { %1432 = vst [vmem:[#allocation7 + $0x48] sm:$0xff] %v1400_v32  ;;  %1433 = vst [vmem:[#allocation7 + $0x50] sm:$0xff] %v1401_v36  ;;  %v1413_v34 = vmul.f32 %v1374_v8, %v2372_v49  ;;  %v1414_v56 = vmul.f32 %v1374_v8, %v2373_v30  ;;  %v1415_v13 = vmul.f32 %v1378_v14, %v2374_v19 }
 0x47c   :  { %1434 = vst [vmem:[#allocation7 + $0x58] sm:$0xff] %v1402_v3  ;;  %1435 = vst [vmem:[#allocation7 + $0x60] sm:$0xff] %v1403_v57  ;;  %v1416_v21 = vmul.f32 %v1378_v14, %v2375_v61  ;;  %v1417_v37 = vmul.f32 %v1378_v14, %v2376_v29  ;;  %v1418_v22 = vmul.f32 %v1378_v14, %v2377_v62 }
 0x47d   :  { %1436 = vst [vmem:[#allocation7 + $0x68] sm:$0xff] %v1404_v26  ;;  %1437 = vst [vmem:[#allocation7 + $0x70] sm:$0xff] %v1405_v59  ;;  %v1419_v24 = vmul.f32 %v1382_v0, %v2378_v39  ;;  %v1420_v35 = vmul.f32 %v1382_v0, %v2379_v53  ;;  %v1421_v47 = vmul.f32 %v1382_v0, %v2380_v28 }
 0x47e   :  { %1438 = vst [vmem:[#allocation7 + $0x78] sm:$0xff] %v1406_v63  ;;  %1439 = vst [vmem:[#allocation7 + $0x80] sm:$0xff] %v1407_v2  ;;  %v1422_v58 = vmul.f32 %v1382_v0, %v2381_v15 }
 0x47f   :  { %1440 = vst [vmem:[#allocation7 + $0x88] sm:$0xff] %v1408_v50  ;;  %1441 = vst [vmem:[#allocation7 + $0x90] sm:$0xff] %v1409_v48 }
 0x480   :  { %1442 = vst [vmem:[#allocation7 + $0x98] sm:$0xff] %v1410_v6  ;;  %1443 = vst [vmem:[#allocation7 + $0xa0] sm:$0xff] %v1411_v5 }
 0x481   :  { %1444 = vst [vmem:[#allocation7 + $0xa8] sm:$0xff] %v1412_v4  ;;  %1445 = vst [vmem:[#allocation7 + $0xb0] sm:$0xff] %v1413_v34 }
 0x482   :  { %1446 = vst [vmem:[#allocation7 + $0xb8] sm:$0xff] %v1414_v56  ;;  %1447 = vst [vmem:[#allocation7 + $0xc0] sm:$0xff] %v1415_v13 }
 0x483   :  { %1448 = vst [vmem:[#allocation7 + $0xc8] sm:$0xff] %v1416_v21  ;;  %1449 = vst [vmem:[#allocation7 + $0xd0] sm:$0xff] %v1417_v37 }
 0x484   :  { %1450 = vst [vmem:[#allocation7 + $0xd8] sm:$0xff] %v1418_v22  ;;  %1451 = vst [vmem:[#allocation7 + $0xe0] sm:$0xff] %v1419_v24 }
 0x485   :  { %1452 = vst [vmem:[#allocation7 + $0xe8] sm:$0xff] %v1420_v35  ;;  %1453 = vst [vmem:[#allocation7 + $0xf0] sm:$0xff] %v1421_v47 }
 0x486   :  { %1454 = vst [vmem:[#allocation7 + $0xf8] sm:$0xff] %v1422_v58 }
 0x487   :  { %1591 = shalt.err (!%p1588_p3)
}
 0x488   :  { %s1592_s13 = scalar_lea.hbm %s2313_s4, 4096 }
 0x489   :  { %p1593_p4 = scmp.ne.s32.totalorder %s2313_s4, %s1592_s13  ;;  %p1596_p5 = scmp.lt.u32.totalorder %s1592_s13, %s2313_s4 }
 0x48b   :  { %p1598_p6 = pnand %p1596_p5, %p1593_p4 }
 0x48d   :  { %1601 = shalt.err (!%p1598_p6)
}
 0x48e   :  { %1466 = dma.vmem_to_hbm [thread:$0]  %s1461_s9, 4096, %s2313_s4, [#allocation4], %s1609_s3, %s1609_s3, %s1610_s28  }
 0x48f   :  { %1606 = dma.done.wait [#allocation4], 4096  }
 0x490   :  { %1607 = vsyncadd [#allocation4], 4294963200 }
 0x491   :  { %1470 = vsyncpa [#allocation3], 1 }
 0x492   :  { %1471 = vsyncpa [#allocation4], 1 }
 0x493   :  { %1472 = vsyncpa [#allocation5], 1 }

</bundles_post_ra>
